<compile_context>
chip_gen: v5e
topology: v5e:2x2
jax: 0.10.0
libtpu: 0.0.40
codegen_flags: <defaults>
</compile_context>

<pallas_src>
import numpy as np
import jax
import jax.numpy as jnp
from jax import lax
from jax.experimental import pallas as pl
from jax.experimental.pallas import tpu as pltpu

# ---- small config (scaled-down analogue of the PyTorch Config) ----
B = 2                      # batch           (orig 20)
S = 8                      # pad_size / seq  (orig 500)
D = 32                     # embed/dim_model (orig 300)
QK = 64                    # query_key_dim   (orig 128)
QK_P = 128                 # qk path zero-padded to a full lane width
EXPANSION = 2.0
H = int(EXPANSION * D)     # hidden_dim      (orig 600)
NUM_CLASSES = 2
NUM_GAU = 4
N_VOCAB = 50
NUM_BUCKETS = 32
MAX_DISTANCE = 128
ROT_DIM = min(32, QK)      # rotary dim
LN_EPS = 1e-5
MASK_NEG = -1e30           # finite sentinel for causal / cross-batch mask

BS = B * S                 # merged batch*seq rows

VEC_ROWS = 16              # packed small-parameter array: (16, 128)
VEC_W = 128


# ----------------------------------------------------------------------------
# In-kernel helpers
# ----------------------------------------------------------------------------
def _quant_rows(x):
    """Per-row symmetric quant to integer values in [-15, 15] (trunc toward 0).
    Returns (quantized values as f32, per-row scale used for dequant)."""
    rmax = jnp.max(jnp.abs(x), axis=-1, keepdims=True)
    rscale = rmax / 15.0                               # divide on (rows,1) only
    inv = 1.0 / jnp.where(rscale == 0.0, 1.0, rscale)  # guard 0/0 (torch -> NaN)
    q = jnp.clip(x * inv, -15.0, 15.0).astype(jnp.int32).astype(jnp.float32)
    return q, rscale


# ----------------------------------------------------------------------------
# Fused GAU-stack kernel: ONE grid step, ALL batch elements, ALL 4 layers
# ----------------------------------------------------------------------------
def fused_gau_kernel(x_ref, vecs_ref, w_hid_ref, w_qk_ref, w_out_ref,
                     rope_ref, rel_ref, o_ref):
    x0 = x_ref[...]                                    # (BS, D) f32

    # ---- unpack packed small parameters once (outside the layer loop) ----
    vecs = vecs_ref[...]                               # (16, 128) f32
    ln_g      = vecs[0:1, :D]
    ln_b      = vecs[1:2, :D]
    inv_qk_s  = vecs[2:3, :D]                          # 1 / gau_scales[0]
    inv_hid_s = vecs[3:4, :D]                          # 1 / gau_scales[1]
    inv_out_s = vecs[4:5, :H]                          # 1 / gau_scales[2]
    hidden_p  = vecs[5:6, :2 * H]                      # weight_quant_params[0]
    qk_p      = vecs[6:7, :QK_P]                       # weight_quant_params[1] (padded)
    b_hid     = vecs[7:8, :2 * H]
    b_qk      = vecs[8:9, :QK_P]
    b_out     = vecs[9:10, :D]                         # out_params already folded in

    w_hid = w_hid_ref[...]                             # (D, 2H)   bf16
    w_qk  = w_qk_ref[...]                              # (D, QK_P) bf16 (zero-padded)
    w_out = w_out_ref[...]                             # (H, D)    bf16 (out_p folded)

    rope = rope_ref[...]                               # (8*BS, QK_P) f32
    BS2 = 2 * BS
    cos2   = rope[0:BS2, :]
    sin2   = rope[BS2:2 * BS2, :]
    gamma2 = rope[2 * BS2:3 * BS2, :]
    beta2  = rope[3 * BS2:4 * BS2, :]

    rel_bias = rel_ref[...]                            # (BS, BS): T5 bias + masks folded

    # ---- loop-invariant masks / constants (hoisted; traced once) ----
    row_id = lax.broadcasted_iota(jnp.int32, (BS, D), 0)
    col_id = lax.broadcasted_iota(jnp.int32, (BS, D), 1)
    keep_shift = row_id != 0
    for b in range(1, B):                              # rows that are NOT first-of-sequence
        keep_shift = jnp.logical_and(keep_shift, row_id != b * S)
    is_shift_col = col_id < (D // 2)
    lane_even = (lax.broadcasted_iota(jnp.int32, (BS2, QK_P), 1) & 1) == 0
    inv_seq = 1.0 / float(S)

    def layer(_, act):
        x_in = act                                     # (BS, D)

        # ---- LayerNorm: mean and E[x^2] from one stacked reduction ----
        stk = jnp.concatenate([x_in, x_in * x_in], axis=0)       # (2BS, D)
        mu2 = jnp.mean(stk, axis=-1, keepdims=True)              # (2BS, 1)
        mean = mu2[:BS]
        var = mu2[BS:] - mean * mean
        normed = (x_in - mean) * lax.rsqrt(var + LN_EPS) * ln_g + ln_b

        # ---- token shift of first D//2 features by one position (XLU, per seq) ----
        parts = []
        for b in range(B):                             # vreg-aligned per-sequence rolls
            parts.append(pltpu.roll(normed[b * S:(b + 1) * S, :], shift=1, axis=0))
        rolled = jnp.concatenate(parts, axis=0)        # (BS, D)
        shifted = jnp.where(keep_shift, rolled, 0.0)
        normed = jnp.where(is_shift_col, shifted, normed)

        # ---- AWQ activation scaling + per-row quant (hidden & qk paths in one pass) ----
        ns2 = jnp.concatenate([normed * inv_hid_s, normed * inv_qk_s], axis=0)  # (2BS, D)
        ns2_q, ns2_rs = _quant_rows(ns2)
        nx_hid_q, hid_rs = ns2_q[:BS], ns2_rs[:BS]
        nx_qk_q, qk_rs = ns2_q[BS:], ns2_rs[BS:]

        # ---- to_hidden: Linear + SiLU (single bf16 MXU pass); dequant AFTER SiLU (matches ref) ----
        vg = jnp.dot(nx_hid_q.astype(jnp.bfloat16), w_hid,
                     preferred_element_type=jnp.float32) + b_hid
        vg = vg * jax.nn.sigmoid(vg)                   # SiLU
        vg = vg * (hid_rs * hidden_p)
        v, gate = vg[:, :H], vg[:, H:]

        # ---- to_qk: Linear + SiLU, dequant ----
        qk = jnp.dot(nx_qk_q.astype(jnp.bfloat16), w_qk,
                     preferred_element_type=jnp.float32) + b_qk
        qk = qk * jax.nn.sigmoid(qk)
        qk = qk * (qk_rs * qk_p)

        # ---- OffsetScale + rotary on the stacked (2BS, QK_P) q/k tile ----
        qk2 = jnp.concatenate([qk, qk], axis=0)        # rows 0..BS-1 -> q, BS..2BS-1 -> k
        qk2 = qk2 * gamma2 + beta2
        # rotate_half via XLU lane rolls: even lane j -> -x[j+1], odd lane j -> x[j-1]
        roll_p1 = pltpu.roll(qk2, shift=1, axis=1)          # y[j] = x[j-1]
        roll_m1 = pltpu.roll(qk2, shift=QK_P - 1, axis=1)   # y[j] = x[j+1]
        rot = jnp.where(lane_even, -roll_m1, roll_p1)
        qk2 = qk2 * cos2 + rot * sin2                  # cos=1/sin=0 beyond ROT_DIM & padding

        # ---- quantize q, k together (per row) ----
        qk2_q, qk2_rs = _quant_rows(qk2)
        q_q = qk2_q[:BS].astype(jnp.bfloat16)          # exact: integers <= 15
        k_q = qk2_q[BS:].astype(jnp.bfloat16)
        q_rs, k_rs = qk2_rs[:BS], qk2_rs[BS:]

        # ---- attention scores (bf16 MXU, f32 accumulate) ----
        sim = lax.dot_general(q_q, k_q, (((1,), (1,)), ((), ())),
                              preferred_element_type=jnp.float32)     # (BS, BS)
        sim = sim * lax.dot_general(q_rs, k_rs, (((1,), (1,)), ((), ())),
                                    preferred_element_type=jnp.float32)
        sim = sim + rel_bias                           # T5 bias + causal + cross-batch mask

        attn = jnp.maximum(sim * inv_seq, 0.0)
        attn = attn * attn                             # ReLU^2 (masked entries -> exactly 0)

        # ---- quant attn (per row) and v (per batch, per column, as in reference) ----
        attn_q, attn_rs = _quant_rows(attn)
        cs_parts, cinv_parts = [], []
        for b in range(B):
            vb = v[b * S:(b + 1) * S, :]                              # (S, H), vreg-aligned
            cm = jnp.max(jnp.abs(vb), axis=0, keepdims=True) / 15.0   # (1, H)
            ci = 1.0 / jnp.where(cm == 0.0, 1.0, cm)
            cs_parts.append(jnp.broadcast_to(cm * inv_out_s, (S, H)))  # fold 1/out_s in
            cinv_parts.append(jnp.broadcast_to(ci, (S, H)))
        cs_full = jnp.concatenate(cs_parts, axis=0)     # (BS, H) dequant scale (incl 1/out_s)
        cinv_full = jnp.concatenate(cinv_parts, axis=0)
        v_q = jnp.clip(v * cinv_full, -15.0, 15.0).astype(jnp.int32).astype(jnp.float32)

        out = jnp.dot(attn_q.astype(jnp.bfloat16), v_q.astype(jnp.bfloat16),
                      preferred_element_type=jnp.float32)             # (BS, H)
        out = out * (attn_rs * cs_full)                # outer(attn_rs, v_col_scale/out_s)
        out = out * gate

        # ---- quant, to_out Linear (out_params pre-folded), dequant, residual ----
        out_q, out_rs = _quant_rows(out)
        out2 = jnp.dot(out_q.astype(jnp.bfloat16), w_out,
                       preferred_element_type=jnp.float32) + b_out
        out2 = out2 * out_rs
        return out2 + x_in                             # add_residual

    o_ref[...] = lax.fori_loop(0, NUM_GAU, layer, x0)


def gau_stack(x_flat, params):
    plist = [params["vecs"], params["w_hid"], params["w_qk"], params["w_out"],
             params["rope_gb"], params["rel_bias"]]
    in_specs = [pl.BlockSpec((BS, D), lambda i: (0, 0))]
    in_specs += [pl.BlockSpec(t.shape, lambda i: (0, 0)) for t in plist]
    # Single-step grid: the whole merged (B*S, D) activation lives in one block.
    # (On v7x this trades away the 2-TC batch split; at these sizes the merged
    #  layout halves the serialized tiny-matmul count on v5e/v6e.)
    return pl.pallas_call(
        fused_gau_kernel,
        out_shape=jax.ShapeDtypeStruct((BS, D), jnp.float32),
        grid=(1,),
        in_specs=in_specs,
        out_specs=pl.BlockSpec((BS, D), lambda i: (0, 0)),
        compiler_params=pltpu.CompilerParams(dimension_semantics=("arbitrary",)),
    )(x_flat, *plist)


# ----------------------------------------------------------------------------
# Parameter / constant construction (deterministic, in-script)
# ----------------------------------------------------------------------------
def _positional_encoding():
    pe = np.array([[pos / (10000.0 ** (i // 2 * 2.0 / D)) for i in range(D)]
                   for pos in range(S)], dtype=np.float32)
    pe[:, 0::2] = np.sin(pe[:, 0::2])
    pe[:, 1::2] = np.cos(pe[:, 1::2])
    return jnp.asarray(pe)


def _t5_rel_bias_full(rel_emb):
    """Per-sequence T5 relative-position bias with the causal mask and the
    cross-batch block-diagonal mask folded in (finite -1e30 sentinel)."""
    scale = QK ** 0.5
    q_pos = np.arange(S)
    k_pos = np.arange(S)
    rel_pos = k_pos[None, :] - q_pos[:, None]
    n = np.maximum(-rel_pos, 0)                    # causal bucketing
    max_exact = NUM_BUCKETS // 2
    is_small = n < max_exact
    n_safe = np.maximum(n, 1)
    val_if_large = max_exact + (np.log(n_safe / max_exact) /
                                np.log(MAX_DISTANCE / max_exact)
                                * (NUM_BUCKETS - max_exact)).astype(np.int64)
    val_if_large = np.minimum(val_if_large, NUM_BUCKETS - 1)
    bucket = np.where(is_small, n, val_if_large)
    values = np.asarray(rel_emb)[bucket, 0] * scale            # (S, S)
    blk = np.where(np.tril(np.ones((S, S), bool)), values, MASK_NEG).astype(np.float32)
    full = np.full((BS, BS), MASK_NEG, np.float32)
    for b in range(B):
        full[b * S:(b + 1) * S, b * S:(b + 1) * S] = blk
    return jnp.asarray(full)


def _rotary_consts():
    freqs = 1.0 / (10000.0 ** (np.arange(0, ROT_DIM, 2, dtype=np.float32) / ROT_DIM))
    t = np.arange(S, dtype=np.float32)
    f = np.einsum("i,j->ij", t, freqs)             # (S, ROT_DIM//2)
    f = np.repeat(f, 2, axis=-1)                   # interleaved: (S, ROT_DIM)
    cos = np.ones((S, QK_P), np.float32)           # identity beyond ROT_DIM / padding
    sin = np.zeros((S, QK_P), np.float32)
    cos[:, :ROT_DIM] = np.cos(f)
    sin[:, :ROT_DIM] = np.sin(f)
    return cos, sin


def init_params(key):
    keys = jax.random.split(key, 8)

    def lin(k, fan_in, fan_out):
        kw, kb = jax.random.split(k)
        bound = 1.0 / np.sqrt(fan_in)
        w = jax.random.uniform(kw, (fan_in, fan_out), jnp.float32, -bound, bound)
        b = jax.random.uniform(kb, (1, fan_out), jnp.float32, -bound, bound)
        return w, b

    emb = jax.random.normal(keys[0], (N_VOCAB, D), jnp.float32)
    emb = emb.at[N_VOCAB - 1].set(0.0)             # padding_idx row = 0

    w_hid, b_hid = lin(keys[1], D, 2 * H)          # to_hidden
    w_qk, b_qk = lin(keys[2], D, QK)               # to_qk
    w_out, b_out = lin(keys[3], H, D)              # to_out
    gamma = 0.02 * jax.random.normal(keys[4], (2, QK), jnp.float32)   # OffsetScale
    beta = jnp.zeros((2, QK), jnp.float32)
    rel_emb = jax.random.normal(keys[5], (NUM_BUCKETS, 1), jnp.float32)
    w_fc, b_fc = lin(keys[6], S * D, NUM_CLASSES)  # fc1

    cos, sin = _rotary_consts()                    # numpy (S, QK_P)

    # AWQ scales / quant params (all ones, as in the reference script)
    qk_s = jnp.ones((D,), jnp.float32)             # gau_scales[0]
    hidden_s = jnp.ones((D,), jnp.float32)         # gau_scales[1]
    out_s = jnp.ones((H,), jnp.float32)            # gau_scales[2]
    hidden_p = jnp.ones((2 * H,), jnp.float32)     # weight_quant_params[0]
    qk_p = jnp.ones((QK,), jnp.float32)            # weight_quant_params[1]
    out_p = jnp.ones((D,), jnp.float32)            # weight_quant_params[2]
    ln_g = jnp.ones((D,), jnp.float32)
    ln_b = jnp.zeros((D,), jnp.float32)

    # ---- zero-pad the qk path to QK_P lanes (numerical no-op) ----
    w_qk_p = jnp.zeros((D, QK_P), jnp.float32).at[:, :QK].set(w_qk)
    b_qk_p = jnp.zeros((QK_P,), jnp.float32).at[:QK].set(b_qk.reshape(-1))
    qk_p_p = jnp.zeros((QK_P,), jnp.float32).at[:QK].set(qk_p)
    gamma_p = jnp.zeros((2, QK_P), jnp.float32).at[:, :QK].set(gamma)
    beta_p = jnp.zeros((2, QK_P), jnp.float32).at[:, :QK].set(beta)

    # ---- fold out_params (per output column) into the to_out weight + bias ----
    w_out_f = w_out * out_p[None, :]
    b_out_f = b_out.reshape(-1) * out_p

    # ---- pack the small (1,N) vectors into one (16,128) array ----
    vecs = jnp.zeros((VEC_ROWS, VEC_W), jnp.float32)
    rows = [ln_g, ln_b, 1.0 / qk_s, 1.0 / hidden_s, 1.0 / out_s,
            hidden_p, qk_p_p, b_hid.reshape(-1), b_qk_p, b_out_f]
    for r, vrow in enumerate(rows):
        vecs = vecs.at[r, : vrow.shape[0]].set(vrow.astype(jnp.float32))

    # ---- pack cos/sin/gamma/beta, tiled over batch and stacked [q ; k] ----
    cos_bs = jnp.asarray(np.tile(cos, (B, 1)))                        # (BS, QK_P)
    sin_bs = jnp.asarray(np.tile(sin, (B, 1)))
    g_q = jnp.broadcast_to(gamma_p[0:1, :], (BS, QK_P))
    g_k = jnp.broadcast_to(gamma_p[1:2, :], (BS, QK_P))
    bt_q = jnp.broadcast_to(beta_p[0:1, :], (BS, QK_P))
    bt_k = jnp.broadcast_to(beta_p[1:2, :], (BS, QK_P))
    rope_gb = jnp.concatenate([cos_bs, cos_bs, sin_bs, sin_bs,
                               g_q, g_k, bt_q, bt_k], axis=0)          # (8*BS, QK_P)

    params = {
        # embedding / positional encoding / classifier (plain-JAX glue)
        "emb": emb, "pe": _positional_encoding(), "w_fc": w_fc, "b_fc": b_fc,
        # fused-GAU kernel inputs (shared by all NUM_GAU deep-copied layers)
        "vecs": vecs,
        "w_hid": w_hid.astype(jnp.bfloat16),       # single-pass bf16 MXU weights
        "w_qk": w_qk_p.astype(jnp.bfloat16),
        "w_out": w_out_f.astype(jnp.bfloat16),
        "rope_gb": rope_gb,
        "rel_bias": _t5_rel_bias_full(rel_emb),
    }
    return params


# ----------------------------------------------------------------------------
# Full model forward
# ----------------------------------------------------------------------------
@jax.jit
def model_forward(x_ids, params):
    out = params["emb"][x_ids]                 # embedding lookup (XLA glue)
    out = out + params["pe"][None]             # positional encoding (dropout = identity)
    out = gau_stack(out.reshape(BS, D), params)  # all 4 GAU layers, one pallas_call
    out = out.reshape(B, S * D)
    # TODO(synk): the (B, S*D) @ (S*D, 2) classifier is left to XLA — a
    # dedicated Pallas call for a 2-lane output is pure launch/masked-store
    # overhead at these shapes.
    return jnp.dot(out, params["w_fc"]) + params["b_fc"]


if __name__ == "__main__":
    key = jax.random.PRNGKey(0)
    k_params, k_ids = jax.random.split(key)
    params = init_params(k_params)
    x_ids = jax.random.randint(k_ids, (B, S), 0, N_VOCAB - 1, dtype=jnp.int32)

    logits = model_forward(x_ids, params)
    jax.block_until_ready(logits)
    assert logits.shape == (B, NUM_CLASSES)
    assert bool(jnp.all(jnp.isfinite(logits)))
    print("KERNEL_OK")
</pallas_src>

<mosaic_0001>
module attributes {stable_mosaic.version = 11 : i64} {
  func.func @fused_gau_kernel(%arg0: i32, %arg1: memref<16x32xf32, #tpu.memory_space<vmem>>, %arg2: memref<16x128xf32, #tpu.memory_space<vmem>>, %arg3: memref<32x128xbf16, #tpu.memory_space<vmem>>, %arg4: memref<32x128xbf16, #tpu.memory_space<vmem>>, %arg5: memref<64x32xbf16, #tpu.memory_space<vmem>>, %arg6: memref<128x128xf32, #tpu.memory_space<vmem>>, %arg7: memref<16x16xf32, #tpu.memory_space<vmem>>, %arg8: memref<16x32xf32, #tpu.memory_space<vmem>>) attributes {dimension_semantics = [#tpu.dimension_semantics<arbitrary>], iteration_bounds = array<i64: 1>, scalar_prefetch = 0 : i64, scratch_operands = 0 : i64, tpu.core_type = #tpu.core_type<tc>, window_params = [{pipeline_mode = #tpu.pipeline_mode<synchronous>, transform_indices = @transform_0, window_bounds = array<i64: 16, 32>}, {pipeline_mode = #tpu.pipeline_mode<synchronous>, transform_indices = @transform_1, window_bounds = array<i64: 16, 128>}, {pipeline_mode = #tpu.pipeline_mode<synchronous>, transform_indices = @transform_2, window_bounds = array<i64: 32, 128>}, {pipeline_mode = #tpu.pipeline_mode<synchronous>, transform_indices = @transform_3, window_bounds = array<i64: 32, 128>}, {pipeline_mode = #tpu.pipeline_mode<synchronous>, transform_indices = @transform_4, window_bounds = array<i64: 64, 32>}, {pipeline_mode = #tpu.pipeline_mode<synchronous>, transform_indices = @transform_5, window_bounds = array<i64: 128, 128>}, {pipeline_mode = #tpu.pipeline_mode<synchronous>, transform_indices = @transform_6, window_bounds = array<i64: 16, 16>}, {pipeline_mode = #tpu.pipeline_mode<synchronous>, transform_indices = @transform_7, window_bounds = array<i64: 16, 32>}]} {
    %c0 = arith.constant 0 : index
    %c0_0 = arith.constant 0 : index
    %0 = vector.load %arg1[%c0, %c0_0] : memref<16x32xf32, #tpu.memory_space<vmem>>, vector<16x32xf32>
    %c0_1 = arith.constant 0 : index
    %c0_2 = arith.constant 0 : index
    %1 = vector.load %arg2[%c0_1, %c0_2] : memref<16x128xf32, #tpu.memory_space<vmem>>, vector<16x128xf32>
    %2 = vector.extract_strided_slice %1 {offsets = [0, 0], sizes = [1, 32], strides = [1, 1]} : vector<16x128xf32> to vector<1x32xf32>
    %3 = vector.extract_strided_slice %1 {offsets = [1, 0], sizes = [1, 32], strides = [1, 1]} : vector<16x128xf32> to vector<1x32xf32>
    %4 = vector.extract_strided_slice %1 {offsets = [2, 0], sizes = [1, 32], strides = [1, 1]} : vector<16x128xf32> to vector<1x32xf32>
    %5 = vector.extract_strided_slice %1 {offsets = [3, 0], sizes = [1, 32], strides = [1, 1]} : vector<16x128xf32> to vector<1x32xf32>
    %6 = vector.extract_strided_slice %1 {offsets = [4, 0], sizes = [1, 64], strides = [1, 1]} : vector<16x128xf32> to vector<1x64xf32>
    %7 = vector.extract_strided_slice %1 {offsets = [5, 0], sizes = [1, 128], strides = [1, 1]} : vector<16x128xf32> to vector<1x128xf32>
    %8 = vector.extract_strided_slice %1 {offsets = [6, 0], sizes = [1, 128], strides = [1, 1]} : vector<16x128xf32> to vector<1x128xf32>
    %9 = vector.extract_strided_slice %1 {offsets = [7, 0], sizes = [1, 128], strides = [1, 1]} : vector<16x128xf32> to vector<1x128xf32>
    %10 = vector.extract_strided_slice %1 {offsets = [8, 0], sizes = [1, 128], strides = [1, 1]} : vector<16x128xf32> to vector<1x128xf32>
    %11 = vector.extract_strided_slice %1 {offsets = [9, 0], sizes = [1, 32], strides = [1, 1]} : vector<16x128xf32> to vector<1x32xf32>
    %c0_3 = arith.constant 0 : index
    %c0_4 = arith.constant 0 : index
    %12 = vector.load %arg3[%c0_3, %c0_4] : memref<32x128xbf16, #tpu.memory_space<vmem>>, vector<32x128xbf16>
    %c0_5 = arith.constant 0 : index
    %c0_6 = arith.constant 0 : index
    %13 = vector.load %arg4[%c0_5, %c0_6] : memref<32x128xbf16, #tpu.memory_space<vmem>>, vector<32x128xbf16>
    %c0_7 = arith.constant 0 : index
    %c0_8 = arith.constant 0 : index
    %14 = vector.load %arg5[%c0_7, %c0_8] : memref<64x32xbf16, #tpu.memory_space<vmem>>, vector<64x32xbf16>
    %c0_9 = arith.constant 0 : index
    %c0_10 = arith.constant 0 : index
    %15 = vector.load %arg6[%c0_9, %c0_10] : memref<128x128xf32, #tpu.memory_space<vmem>>, vector<128x128xf32>
    %16 = vector.extract_strided_slice %15 {offsets = [0, 0], sizes = [32, 128], strides = [1, 1]} : vector<128x128xf32> to vector<32x128xf32>
    %17 = vector.extract_strided_slice %15 {offsets = [32, 0], sizes = [32, 128], strides = [1, 1]} : vector<128x128xf32> to vector<32x128xf32>
    %18 = vector.extract_strided_slice %15 {offsets = [64, 0], sizes = [32, 128], strides = [1, 1]} : vector<128x128xf32> to vector<32x128xf32>
    %19 = vector.extract_strided_slice %15 {offsets = [96, 0], sizes = [32, 128], strides = [1, 1]} : vector<128x128xf32> to vector<32x128xf32>
    %c0_11 = arith.constant 0 : index
    %c0_12 = arith.constant 0 : index
    %20 = vector.load %arg7[%c0_11, %c0_12] : memref<16x16xf32, #tpu.memory_space<vmem>>, vector<16x16xf32>
    %21 = tpu.iota {dimensions = array<i32: 0>} : vector<16x32xi32>
    %22 = tpu.iota {dimensions = array<i32: 1>} : vector<16x32xi32>
    %c0_i32 = arith.constant 0 : i32
    %23 = vector.broadcast %c0_i32 : i32 to vector<16x32xi32>
    %24 = arith.cmpi ne, %21, %23 : vector<16x32xi32>
    %c8_i32 = arith.constant 8 : i32
    %25 = vector.broadcast %c8_i32 : i32 to vector<16x32xi32>
    %26 = arith.cmpi ne, %21, %25 : vector<16x32xi32>
    %27 = arith.andi %24, %26 : vector<16x32xi1>
    %c16_i32 = arith.constant 16 : i32
    %28 = vector.broadcast %c16_i32 : i32 to vector<16x32xi32>
    %29 = arith.cmpi slt, %22, %28 : vector<16x32xi32>
    %30 = tpu.iota {dimensions = array<i32: 1>} : vector<32x128xi32>
    %c1_i32 = arith.constant 1 : i32
    %31 = vector.broadcast %c1_i32 : i32 to vector<32x128xi32>
    %32 = arith.andi %30, %31 : vector<32x128xi32>
    %c0_i32_13 = arith.constant 0 : i32
    %33 = vector.broadcast %c0_i32_13 : i32 to vector<32x128xi32>
    %34 = arith.cmpi eq, %32, %33 : vector<32x128xi32>
    %c0_i32_14 = arith.constant 0 : i32
    %c4_i32 = arith.constant 4 : i32
    %35 = arith.addi %c0_i32_14, %c4_i32 : i32
    %c1_i32_15 = arith.constant 1 : i32
    %36 = scf.for %arg9 = %c0_i32_14 to %35 step %c1_i32_15 iter_args(%arg10 = %0) -> (vector<16x32xf32>)  : i32 {
      %38 = arith.mulf %arg10, %arg10 : vector<16x32xf32>
      %39 = tpu.concatenate %arg10, %38 in 0 : vector<16x32xf32>, vector<16x32xf32> -> vector<32x32xf32>
      %cst = arith.constant dense<0.000000e+00> : vector<32xf32>
      %40 = vector.multi_reduction <add>, %39, %cst [1] : vector<32x32xf32> to vector<32xf32>
      %41 = vector.shape_cast %40 : vector<32xf32> to vector<32x1xf32>
      %cst_18 = arith.constant 3.200000e+01 : f32
      %42 = vector.broadcast %cst_18 : f32 to vector<32x1xf32>
      %43 = arith.divf %41, %42 : vector<32x1xf32>
      %44 = vector.extract_strided_slice %43 {offsets = [0, 0], sizes = [16, 1], strides = [1, 1]} : vector<32x1xf32> to vector<16x1xf32>
      %45 = vector.extract_strided_slice %43 {offsets = [16, 0], sizes = [16, 1], strides = [1, 1]} : vector<32x1xf32> to vector<16x1xf32>
      %46 = arith.mulf %44, %44 : vector<16x1xf32>
      %47 = arith.subf %45, %46 : vector<16x1xf32>
      %48 = vector.broadcast %44 : vector<16x1xf32> to vector<16x32xf32>
      %49 = arith.subf %arg10, %48 : vector<16x32xf32>
      %cst_19 = arith.constant 9.99999974E-6 : f32
      %50 = vector.broadcast %cst_19 : f32 to vector<16x1xf32>
      %51 = arith.addf %47, %50 : vector<16x1xf32>
      %52 = math.rsqrt %51 : vector<16x1xf32>
      %53 = vector.broadcast %52 : vector<16x1xf32> to vector<16x32xf32>
      %54 = arith.mulf %49, %53 : vector<16x32xf32>
      %55 = vector.broadcast %2 : vector<1x32xf32> to vector<16x32xf32>
      %56 = arith.mulf %54, %55 : vector<16x32xf32>
      %57 = vector.broadcast %3 : vector<1x32xf32> to vector<16x32xf32>
      %58 = arith.addf %56, %57 : vector<16x32xf32>
      %59 = vector.extract_strided_slice %58 {offsets = [0, 0], sizes = [8, 32], strides = [1, 1]} : vector<16x32xf32> to vector<8x32xf32>
      %c1_i32_20 = arith.constant 1 : i32
      %60 = tpu.dynamic_rotate %59 by %c1_i32_20 dim 0 : vector<8x32xf32>, i32 -> vector<8x32xf32>
      %61 = vector.extract_strided_slice %58 {offsets = [8, 0], sizes = [8, 32], strides = [1, 1]} : vector<16x32xf32> to vector<8x32xf32>
      %c1_i32_21 = arith.constant 1 : i32
      %62 = tpu.dynamic_rotate %61 by %c1_i32_21 dim 0 : vector<8x32xf32>, i32 -> vector<8x32xf32>
      %63 = tpu.concatenate %60, %62 in 0 : vector<8x32xf32>, vector<8x32xf32> -> vector<16x32xf32>
      %cst_22 = arith.constant 0.000000e+00 : f32
      %64 = vector.broadcast %cst_22 : f32 to vector<16x32xf32>
      %65 = arith.select %27, %63, %64 : vector<16x32xi1>, vector<16x32xf32>
      %66 = arith.select %29, %65, %58 : vector<16x32xi1>, vector<16x32xf32>
      %67 = vector.broadcast %5 : vector<1x32xf32> to vector<16x32xf32>
      %68 = arith.mulf %66, %67 : vector<16x32xf32>
      %69 = vector.broadcast %4 : vector<1x32xf32> to vector<16x32xf32>
      %70 = arith.mulf %66, %69 : vector<16x32xf32>
      %71 = tpu.concatenate %68, %70 in 0 : vector<16x32xf32>, vector<16x32xf32> -> vector<32x32xf32>
      %72 = math.absf %71 : vector<32x32xf32>
      %cst_23 = arith.constant dense<0xFF800000> : vector<32xf32>
      %73 = vector.multi_reduction <maximumf>, %72, %cst_23 [1] : vector<32x32xf32> to vector<32xf32>
      %74 = vector.shape_cast %73 : vector<32xf32> to vector<32x1xf32>
      %cst_24 = arith.constant 1.500000e+01 : f32
      %75 = vector.broadcast %cst_24 : f32 to vector<32x1xf32>
      %76 = arith.divf %74, %75 : vector<32x1xf32>
      %cst_25 = arith.constant 0.000000e+00 : f32
      %77 = vector.broadcast %cst_25 : f32 to vector<32x1xf32>
      %78 = arith.cmpf oeq, %76, %77 : vector<32x1xf32>
      %cst_26 = arith.constant 1.000000e+00 : f32
      %79 = vector.broadcast %cst_26 : f32 to vector<32x1xf32>
      %80 = arith.select %78, %79, %76 : vector<32x1xi1>, vector<32x1xf32>
      %cst_27 = arith.constant 1.000000e+00 : f32
      %81 = vector.broadcast %cst_27 : f32 to vector<32x1xf32>
      %82 = arith.divf %81, %80 : vector<32x1xf32>
      %83 = vector.broadcast %82 : vector<32x1xf32> to vector<32x32xf32>
      %84 = arith.mulf %71, %83 : vector<32x32xf32>
      %cst_28 = arith.constant -1.500000e+01 : f32
      %cst_29 = arith.constant 1.500000e+01 : f32
      %85 = vector.broadcast %cst_28 : f32 to vector<32x32xf32>
      %86 = arith.maximumf %85, %84 : vector<32x32xf32>
      %87 = vector.broadcast %cst_29 : f32 to vector<32x32xf32>
      %88 = arith.minimumf %87, %86 : vector<32x32xf32>
      %89 = arith.fptosi %88 : vector<32x32xf32> to vector<32x32xi32>
      %90 = arith.sitofp %89 : vector<32x32xi32> to vector<32x32xf32>
      %91 = vector.extract_strided_slice %90 {offsets = [0, 0], sizes = [16, 32], strides = [1, 1]} : vector<32x32xf32> to vector<16x32xf32>
      %92 = vector.extract_strided_slice %76 {offsets = [0, 0], sizes = [16, 1], strides = [1, 1]} : vector<32x1xf32> to vector<16x1xf32>
      %93 = vector.extract_strided_slice %90 {offsets = [16, 0], sizes = [16, 32], strides = [1, 1]} : vector<32x32xf32> to vector<16x32xf32>
      %94 = vector.extract_strided_slice %76 {offsets = [16, 0], sizes = [16, 1], strides = [1, 1]} : vector<32x1xf32> to vector<16x1xf32>
      %95 = arith.truncf %91 : vector<16x32xf32> to vector<16x32xbf16>
      %cst_30 = arith.constant dense<0.000000e+00> : vector<16x128xf32>
      %96 = tpu.matmul %95, %12, %cst_30 {dimension_numbers = #tpu.dot_dimension_numbers<[1], [0], [0], [1], [0, 0, 1, 1], [], []>} : vector<16x32xbf16>, vector<32x128xbf16>, vector<16x128xf32> -> vector<16x128xf32>
      %97 = vector.broadcast %9 : vector<1x128xf32> to vector<16x128xf32>
      %98 = arith.addf %96, %97 : vector<16x128xf32>
      %99 = arith.negf %98 : vector<16x128xf32>
      %100 = math.exp %99 : vector<16x128xf32>
      %cst_31 = arith.constant 1.000000e+00 : f32
      %101 = vector.broadcast %cst_31 : f32 to vector<16x128xf32>
      %102 = arith.addf %101, %100 : vector<16x128xf32>
      %103 = arith.divf %101, %102 : vector<16x128xf32>
      %104 = arith.mulf %98, %103 : vector<16x128xf32>
      %105 = vector.broadcast %92 : vector<16x1xf32> to vector<16x128xf32>
      %106 = vector.broadcast %7 : vector<1x128xf32> to vector<16x128xf32>
      %107 = arith.mulf %105, %106 : vector<16x128xf32>
      %108 = arith.mulf %104, %107 : vector<16x128xf32>
      %109 = vector.extract_strided_slice %108 {offsets = [0, 0], sizes = [16, 64], strides = [1, 1]} : vector<16x128xf32> to vector<16x64xf32>
      %110 = vector.extract_strided_slice %108 {offsets = [0, 64], sizes = [16, 64], strides = [1, 1]} : vector<16x128xf32> to vector<16x64xf32>
      %111 = arith.truncf %93 : vector<16x32xf32> to vector<16x32xbf16>
      %cst_32 = arith.constant dense<0.000000e+00> : vector<16x128xf32>
      %112 = tpu.matmul %111, %13, %cst_32 {dimension_numbers = #tpu.dot_dimension_numbers<[1], [0], [0], [1], [0, 0, 1, 1], [], []>} : vector<16x32xbf16>, vector<32x128xbf16>, vector<16x128xf32> -> vector<16x128xf32>
      %113 = vector.broadcast %10 : vector<1x128xf32> to vector<16x128xf32>
      %114 = arith.addf %112, %113 : vector<16x128xf32>
      %115 = arith.negf %114 : vector<16x128xf32>
      %116 = math.exp %115 : vector<16x128xf32>
      %cst_33 = arith.constant 1.000000e+00 : f32
      %117 = vector.broadcast %cst_33 : f32 to vector<16x128xf32>
      %118 = arith.addf %117, %116 : vector<16x128xf32>
      %119 = arith.divf %117, %118 : vector<16x128xf32>
      %120 = arith.mulf %114, %119 : vector<16x128xf32>
      %121 = vector.broadcast %94 : vector<16x1xf32> to vector<16x128xf32>
      %122 = vector.broadcast %8 : vector<1x128xf32> to vector<16x128xf32>
      %123 = arith.mulf %121, %122 : vector<16x128xf32>
      %124 = arith.mulf %120, %123 : vector<16x128xf32>
      %125 = tpu.concatenate %124, %124 in 0 : vector<16x128xf32>, vector<16x128xf32> -> vector<32x128xf32>
      %126 = arith.mulf %125, %18 : vector<32x128xf32>
      %127 = arith.addf %126, %19 : vector<32x128xf32>
      %c1_i32_34 = arith.constant 1 : i32
      %128 = tpu.dynamic_rotate %127 by %c1_i32_34 dim 1 : vector<32x128xf32>, i32 -> vector<32x128xf32>
      %c127_i32 = arith.constant 127 : i32
      %129 = tpu.dynamic_rotate %127 by %c127_i32 dim 1 : vector<32x128xf32>, i32 -> vector<32x128xf32>
      %cst_35 = arith.constant 0.000000e+00 : f32
      %130 = vector.broadcast %cst_35 : f32 to vector<32x128xf32>
      %131 = arith.subf %130, %129 : vector<32x128xf32>
      %132 = arith.select %34, %131, %128 : vector<32x128xi1>, vector<32x128xf32>
      %133 = arith.mulf %127, %16 : vector<32x128xf32>
      %134 = arith.mulf %132, %17 : vector<32x128xf32>
      %135 = arith.addf %133, %134 : vector<32x128xf32>
      %136 = math.absf %135 : vector<32x128xf32>
      %cst_36 = arith.constant dense<0xFF800000> : vector<32xf32>
      %137 = vector.multi_reduction <maximumf>, %136, %cst_36 [1] : vector<32x128xf32> to vector<32xf32>
      %138 = vector.shape_cast %137 : vector<32xf32> to vector<32x1xf32>
      %cst_37 = arith.constant 1.500000e+01 : f32
      %139 = vector.broadcast %cst_37 : f32 to vector<32x1xf32>
      %140 = arith.divf %138, %139 : vector<32x1xf32>
      %cst_38 = arith.constant 0.000000e+00 : f32
      %141 = vector.broadcast %cst_38 : f32 to vector<32x1xf32>
      %142 = arith.cmpf oeq, %140, %141 : vector<32x1xf32>
      %cst_39 = arith.constant 1.000000e+00 : f32
      %143 = vector.broadcast %cst_39 : f32 to vector<32x1xf32>
      %144 = arith.select %142, %143, %140 : vector<32x1xi1>, vector<32x1xf32>
      %cst_40 = arith.constant 1.000000e+00 : f32
      %145 = vector.broadcast %cst_40 : f32 to vector<32x1xf32>
      %146 = arith.divf %145, %144 : vector<32x1xf32>
      %147 = vector.broadcast %146 : vector<32x1xf32> to vector<32x128xf32>
      %148 = arith.mulf %135, %147 : vector<32x128xf32>
      %cst_41 = arith.constant -1.500000e+01 : f32
      %cst_42 = arith.constant 1.500000e+01 : f32
      %149 = vector.broadcast %cst_41 : f32 to vector<32x128xf32>
      %150 = arith.maximumf %149, %148 : vector<32x128xf32>
      %151 = vector.broadcast %cst_42 : f32 to vector<32x128xf32>
      %152 = arith.minimumf %151, %150 : vector<32x128xf32>
      %153 = arith.fptosi %152 : vector<32x128xf32> to vector<32x128xi32>
      %154 = arith.sitofp %153 : vector<32x128xi32> to vector<32x128xf32>
      %155 = vector.extract_strided_slice %154 {offsets = [0, 0], sizes = [16, 128], strides = [1, 1]} : vector<32x128xf32> to vector<16x128xf32>
      %156 = arith.truncf %155 : vector<16x128xf32> to vector<16x128xbf16>
      %157 = vector.extract_strided_slice %154 {offsets = [16, 0], sizes = [16, 128], strides = [1, 1]} : vector<32x128xf32> to vector<16x128xf32>
      %158 = arith.truncf %157 : vector<16x128xf32> to vector<16x128xbf16>
      %159 = vector.extract_strided_slice %140 {offsets = [0, 0], sizes = [16, 1], strides = [1, 1]} : vector<32x1xf32> to vector<16x1xf32>
      %160 = vector.extract_strided_slice %140 {offsets = [16, 0], sizes = [16, 1], strides = [1, 1]} : vector<32x1xf32> to vector<16x1xf32>
      %cst_43 = arith.constant dense<0.000000e+00> : vector<16x16xf32>
      %161 = tpu.matmul %156, %158, %cst_43 {dimension_numbers = #tpu.dot_dimension_numbers<[1], [1], [0], [0], [0, 0, 1, 0], [], []>} : vector<16x128xbf16>, vector<16x128xbf16>, vector<16x16xf32> -> vector<16x16xf32>
      %cst_44 = arith.constant dense<0.000000e+00> : vector<16x16xf32>
      %162 = tpu.matmul %159, %160, %cst_44 {dimension_numbers = #tpu.dot_dimension_numbers<[1], [1], [0], [0], [0, 0, 1, 0], [], []>} : vector<16x1xf32>, vector<16x1xf32>, vector<16x16xf32> -> vector<16x16xf32>
      %163 = arith.mulf %161, %162 : vector<16x16xf32>
      %164 = arith.addf %163, %20 : vector<16x16xf32>
      %cst_45 = arith.constant 1.250000e-01 : f32
      %165 = vector.broadcast %cst_45 : f32 to vector<16x16xf32>
      %166 = arith.mulf %164, %165 : vector<16x16xf32>
      %cst_46 = arith.constant 0.000000e+00 : f32
      %167 = vector.broadcast %cst_46 : f32 to vector<16x16xf32>
      %168 = arith.maximumf %166, %167 : vector<16x16xf32>
      %169 = arith.mulf %168, %168 : vector<16x16xf32>
      %170 = math.absf %169 : vector<16x16xf32>
      %cst_47 = arith.constant dense<0xFF800000> : vector<16xf32>
      %171 = vector.multi_reduction <maximumf>, %170, %cst_47 [1] : vector<16x16xf32> to vector<16xf32>
      %172 = vector.shape_cast %171 : vector<16xf32> to vector<16x1xf32>
      %cst_48 = arith.constant 1.500000e+01 : f32
      %173 = vector.broadcast %cst_48 : f32 to vector<16x1xf32>
      %174 = arith.divf %172, %173 : vector<16x1xf32>
      %cst_49 = arith.constant 0.000000e+00 : f32
      %175 = vector.broadcast %cst_49 : f32 to vector<16x1xf32>
      %176 = arith.cmpf oeq, %174, %175 : vector<16x1xf32>
      %cst_50 = arith.constant 1.000000e+00 : f32
      %177 = vector.broadcast %cst_50 : f32 to vector<16x1xf32>
      %178 = arith.select %176, %177, %174 : vector<16x1xi1>, vector<16x1xf32>
      %cst_51 = arith.constant 1.000000e+00 : f32
      %179 = vector.broadcast %cst_51 : f32 to vector<16x1xf32>
      %180 = arith.divf %179, %178 : vector<16x1xf32>
      %181 = vector.broadcast %180 : vector<16x1xf32> to vector<16x16xf32>
      %182 = arith.mulf %169, %181 : vector<16x16xf32>
      %cst_52 = arith.constant -1.500000e+01 : f32
      %cst_53 = arith.constant 1.500000e+01 : f32
      %183 = vector.broadcast %cst_52 : f32 to vector<16x16xf32>
      %184 = arith.maximumf %183, %182 : vector<16x16xf32>
      %185 = vector.broadcast %cst_53 : f32 to vector<16x16xf32>
      %186 = arith.minimumf %185, %184 : vector<16x16xf32>
      %187 = arith.fptosi %186 : vector<16x16xf32> to vector<16x16xi32>
      %188 = arith.sitofp %187 : vector<16x16xi32> to vector<16x16xf32>
      %189 = vector.extract_strided_slice %109 {offsets = [0, 0], sizes = [8, 64], strides = [1, 1]} : vector<16x64xf32> to vector<8x64xf32>
      %190 = math.absf %189 : vector<8x64xf32>
      %cst_54 = arith.constant dense<0xFF800000> : vector<64xf32>
      %191 = vector.multi_reduction <maximumf>, %190, %cst_54 [0] : vector<8x64xf32> to vector<64xf32>
      %192 = vector.shape_cast %191 : vector<64xf32> to vector<1x64xf32>
      %cst_55 = arith.constant 1.500000e+01 : f32
      %193 = vector.broadcast %cst_55 : f32 to vector<1x64xf32>
      %194 = arith.divf %192, %193 : vector<1x64xf32>
      %cst_56 = arith.constant 0.000000e+00 : f32
      %195 = vector.broadcast %cst_56 : f32 to vector<1x64xf32>
      %196 = arith.cmpf oeq, %194, %195 : vector<1x64xf32>
      %cst_57 = arith.constant 1.000000e+00 : f32
      %197 = vector.broadcast %cst_57 : f32 to vector<1x64xf32>
      %198 = arith.select %196, %197, %194 : vector<1x64xi1>, vector<1x64xf32>
      %cst_58 = arith.constant 1.000000e+00 : f32
      %199 = vector.broadcast %cst_58 : f32 to vector<1x64xf32>
      %200 = arith.divf %199, %198 : vector<1x64xf32>
      %201 = arith.mulf %194, %6 : vector<1x64xf32>
      %202 = vector.shape_cast %201 : vector<1x64xf32> to vector<1x64xf32>
      %203 = vector.broadcast %202 : vector<1x64xf32> to vector<8x64xf32>
      %204 = vector.shape_cast %200 : vector<1x64xf32> to vector<1x64xf32>
      %205 = vector.broadcast %204 : vector<1x64xf32> to vector<8x64xf32>
      %206 = vector.extract_strided_slice %109 {offsets = [8, 0], sizes = [8, 64], strides = [1, 1]} : vector<16x64xf32> to vector<8x64xf32>
      %207 = math.absf %206 : vector<8x64xf32>
      %cst_59 = arith.constant dense<0xFF800000> : vector<64xf32>
      %208 = vector.multi_reduction <maximumf>, %207, %cst_59 [0] : vector<8x64xf32> to vector<64xf32>
      %209 = vector.shape_cast %208 : vector<64xf32> to vector<1x64xf32>
      %cst_60 = arith.constant 1.500000e+01 : f32
      %210 = vector.broadcast %cst_60 : f32 to vector<1x64xf32>
      %211 = arith.divf %209, %210 : vector<1x64xf32>
      %cst_61 = arith.constant 0.000000e+00 : f32
      %212 = vector.broadcast %cst_61 : f32 to vector<1x64xf32>
      %213 = arith.cmpf oeq, %211, %212 : vector<1x64xf32>
      %cst_62 = arith.constant 1.000000e+00 : f32
      %214 = vector.broadcast %cst_62 : f32 to vector<1x64xf32>
      %215 = arith.select %213, %214, %211 : vector<1x64xi1>, vector<1x64xf32>
      %cst_63 = arith.constant 1.000000e+00 : f32
      %216 = vector.broadcast %cst_63 : f32 to vector<1x64xf32>
      %217 = arith.divf %216, %215 : vector<1x64xf32>
      %218 = arith.mulf %211, %6 : vector<1x64xf32>
      %219 = vector.shape_cast %218 : vector<1x64xf32> to vector<1x64xf32>
      %220 = vector.broadcast %219 : vector<1x64xf32> to vector<8x64xf32>
      %221 = vector.shape_cast %217 : vector<1x64xf32> to vector<1x64xf32>
      %222 = vector.broadcast %221 : vector<1x64xf32> to vector<8x64xf32>
      %223 = tpu.concatenate %203, %220 in 0 : vector<8x64xf32>, vector<8x64xf32> -> vector<16x64xf32>
      %224 = tpu.concatenate %205, %222 in 0 : vector<8x64xf32>, vector<8x64xf32> -> vector<16x64xf32>
      %225 = arith.mulf %109, %224 : vector<16x64xf32>
      %cst_64 = arith.constant -1.500000e+01 : f32
      %cst_65 = arith.constant 1.500000e+01 : f32
      %226 = vector.broadcast %cst_64 : f32 to vector<16x64xf32>
      %227 = arith.maximumf %226, %225 : vector<16x64xf32>
      %228 = vector.broadcast %cst_65 : f32 to vector<16x64xf32>
      %229 = arith.minimumf %228, %227 : vector<16x64xf32>
      %230 = arith.fptosi %229 : vector<16x64xf32> to vector<16x64xi32>
      %231 = arith.sitofp %230 : vector<16x64xi32> to vector<16x64xf32>
      %232 = arith.truncf %188 : vector<16x16xf32> to vector<16x16xbf16>
      %233 = arith.truncf %231 : vector<16x64xf32> to vector<16x64xbf16>
      %cst_66 = arith.constant dense<0.000000e+00> : vector<16x64xf32>
      %234 = tpu.matmul %232, %233, %cst_66 {dimension_numbers = #tpu.dot_dimension_numbers<[1], [0], [0], [1], [0, 0, 1, 1], [], []>} : vector<16x16xbf16>, vector<16x64xbf16>, vector<16x64xf32> -> vector<16x64xf32>
      %235 = vector.broadcast %174 : vector<16x1xf32> to vector<16x64xf32>
      %236 = arith.mulf %235, %223 : vector<16x64xf32>
      %237 = arith.mulf %234, %236 : vector<16x64xf32>
      %238 = arith.mulf %237, %110 : vector<16x64xf32>
      %239 = math.absf %238 : vector<16x64xf32>
      %cst_67 = arith.constant dense<0xFF800000> : vector<16xf32>
      %240 = vector.multi_reduction <maximumf>, %239, %cst_67 [1] : vector<16x64xf32> to vector<16xf32>
      %241 = vector.shape_cast %240 : vector<16xf32> to vector<16x1xf32>
      %cst_68 = arith.constant 1.500000e+01 : f32
      %242 = vector.broadcast %cst_68 : f32 to vector<16x1xf32>
      %243 = arith.divf %241, %242 : vector<16x1xf32>
      %cst_69 = arith.constant 0.000000e+00 : f32
      %244 = vector.broadcast %cst_69 : f32 to vector<16x1xf32>
      %245 = arith.cmpf oeq, %243, %244 : vector<16x1xf32>
      %cst_70 = arith.constant 1.000000e+00 : f32
      %246 = vector.broadcast %cst_70 : f32 to vector<16x1xf32>
      %247 = arith.select %245, %246, %243 : vector<16x1xi1>, vector<16x1xf32>
      %cst_71 = arith.constant 1.000000e+00 : f32
      %248 = vector.broadcast %cst_71 : f32 to vector<16x1xf32>
      %249 = arith.divf %248, %247 : vector<16x1xf32>
      %250 = vector.broadcast %249 : vector<16x1xf32> to vector<16x64xf32>
      %251 = arith.mulf %238, %250 : vector<16x64xf32>
      %cst_72 = arith.constant -1.500000e+01 : f32
      %cst_73 = arith.constant 1.500000e+01 : f32
      %252 = vector.broadcast %cst_72 : f32 to vector<16x64xf32>
      %253 = arith.maximumf %252, %251 : vector<16x64xf32>
      %254 = vector.broadcast %cst_73 : f32 to vector<16x64xf32>
      %255 = arith.minimumf %254, %253 : vector<16x64xf32>
      %256 = arith.fptosi %255 : vector<16x64xf32> to vector<16x64xi32>
      %257 = arith.sitofp %256 : vector<16x64xi32> to vector<16x64xf32>
      %258 = arith.truncf %257 : vector<16x64xf32> to vector<16x64xbf16>
      %cst_74 = arith.constant dense<0.000000e+00> : vector<16x32xf32>
      %259 = tpu.matmul %258, %14, %cst_74 {dimension_numbers = #tpu.dot_dimension_numbers<[1], [0], [0], [1], [0, 0, 1, 1], [], []>} : vector<16x64xbf16>, vector<64x32xbf16>, vector<16x32xf32> -> vector<16x32xf32>
      %260 = vector.broadcast %11 : vector<1x32xf32> to vector<16x32xf32>
      %261 = arith.addf %259, %260 : vector<16x32xf32>
      %262 = vector.broadcast %243 : vector<16x1xf32> to vector<16x32xf32>
      %263 = arith.mulf %261, %262 : vector<16x32xf32>
      %264 = arith.addf %263, %arg10 : vector<16x32xf32>
      scf.yield %264 : vector<16x32xf32>
    }
    %c0_16 = arith.constant 0 : index
    %c0_17 = arith.constant 0 : index
    %37 = vector.load %arg8[%c0_16, %c0_17] : memref<16x32xf32, #tpu.memory_space<vmem>>, vector<16x32xf32>
    tpu.vector_store %arg8[%c0_16, %c0_17], %36 {strides = array<i32>} : memref<16x32xf32, #tpu.memory_space<vmem>>, vector<16x32xf32>,
    return
  }
  func.func @transform_0(%arg0: i32) -> (i32, i32) {
    %c0_i32 = arith.constant 0 : i32
    %c0_i32_0 = arith.constant 0 : i32
    %c0_i32_1 = arith.constant 0 : i32
    return %c0_i32, %c0_i32_0 : i32, i32
  }
  func.func @transform_1(%arg0: i32) -> (i32, i32) {
    %c0_i32 = arith.constant 0 : i32
    %c0_i32_0 = arith.constant 0 : i32
    %c0_i32_1 = arith.constant 0 : i32
    return %c0_i32, %c0_i32_0 : i32, i32
  }
  func.func @transform_2(%arg0: i32) -> (i32, i32) {
    %c0_i32 = arith.constant 0 : i32
    %c0_i32_0 = arith.constant 0 : i32
    %c0_i32_1 = arith.constant 0 : i32
    return %c0_i32, %c0_i32_0 : i32, i32
  }
  func.func @transform_3(%arg0: i32) -> (i32, i32) {
    %c0_i32 = arith.constant 0 : i32
    %c0_i32_0 = arith.constant 0 : i32
    %c0_i32_1 = arith.constant 0 : i32
    return %c0_i32, %c0_i32_0 : i32, i32
  }
  func.func @transform_4(%arg0: i32) -> (i32, i32) {
    %c0_i32 = arith.constant 0 : i32
    %c0_i32_0 = arith.constant 0 : i32
    %c0_i32_1 = arith.constant 0 : i32
    return %c0_i32, %c0_i32_0 : i32, i32
  }
  func.func @transform_5(%arg0: i32) -> (i32, i32) {
    %c0_i32 = arith.constant 0 : i32
    %c0_i32_0 = arith.constant 0 : i32
    %c0_i32_1 = arith.constant 0 : i32
    return %c0_i32, %c0_i32_0 : i32, i32
  }
  func.func @transform_6(%arg0: i32) -> (i32, i32) {
    %c0_i32 = arith.constant 0 : i32
    %c0_i32_0 = arith.constant 0 : i32
    %c0_i32_1 = arith.constant 0 : i32
    return %c0_i32, %c0_i32_0 : i32, i32
  }
  func.func @transform_7(%arg0: i32) -> (i32, i32) {
    %c0_i32 = arith.constant 0 : i32
    %c0_i32_0 = arith.constant 0 : i32
    %c0_i32_1 = arith.constant 0 : i32
    return %c0_i32, %c0_i32_0 : i32, i32
  }
}

</mosaic_0001>

<bundles_post_ra>
// kernel: model_forward.1
= control target key start
LH: loop header
LB: loop body
LE: loop exit
PB: predicated region body
PF: predicated region fallthrough
CT: control target
= control target key end

     0   :  { %v65_v0 = vlaneseq  ;;  %s1718_s0 = inlined_call_operand.vmem [shape: f32[16,32], index: 0, kind: input, shape index: {}]   ;;  %s1719_s1 = inlined_call_operand.vmem [shape: f32[16,128], index: 1, kind: input, shape index: {}]   ;;  %s1720_s2 = inlined_call_operand.vmem [shape: bf16[32,128], index: 2, kind: input, shape index: {}]   ;;  %s1721_s3 = inlined_call_operand.vmem [shape: bf16[32,128], index: 3, kind: input, shape index: {}]   ;;  %s1722_s7 = inlined_call_operand.vmem [shape: f32[16,32], index: 7, kind: output, shape index: {}]   ;;  %s1723_s4 = inlined_call_operand.vmem [shape: bf16[64,32], index: 4, kind: input, shape index: {}]   ;;  %s1724_s5 = inlined_call_operand.vmem [shape: f32[128,128], index: 5, kind: input, shape index: {}]   ;;  %s1725_s6 = inlined_call_operand.vmem [shape: f32[16,16], index: 6, kind: input, shape index: {}]  }
   0x1   :  { %v27_v1 = vld [vmem:[%s1718_s0] sm:$0xff]   ;;  %v28_v2 = vld [vmem:[%s1718_s0 + $0x8] sm:$0xff]   ;;  %v1279_v18 = vld [vmem:[%s1723_s4 + $0x10] sm:$0xf] }
   0x2   :  { %v1207_v3 = vld [vmem:[%s1719_s1] sm:$0xff]  ;;  %v1212_v4 = vld [vmem:[%s1719_s1 + $0x8] sm:$0xff]  ;;  %v1224_v7 = vshrl.u32 %v65_v0, 7  ;;  %v1284_v19 = vld [vmem:[%s1723_s4 + $0x10] sm:$0xf0]  ;;  %v1319_v27 = vand.u32 127, %v65_v0 }
   0x3   :  { %v1217_v5 = vld [vmem:[%s1720_s2] sm:$0xf]  ;;  %v1222_v6 = vld [vmem:[%s1720_s2] sm:$0xf0]  ;;  %v1229_v8 = vld [vmem:[%s1720_s2 + $0x8] sm:$0xf] }
   0x4   :  { %1730 = vst [vmem:[#allocation2_spill] sm:$0xff] %v1224_v7  ;;  %v1234_v9 = vld [vmem:[%s1720_s2 + $0x8] sm:$0xf0]  ;;  %v1239_v10 = vld [vmem:[%s1721_s3] sm:$0xf]  ;;  %v1302_v23 = vadd.s32 8, %v1224_v7 }
   0x5   :  { %1731 = vst [vmem:[#allocation3_spill] sm:$0xff] %v1229_v8  ;;  %v1244_v11 = vld [vmem:[%s1721_s3] sm:$0xf0]  ;;  %v1249_v12 = vld [vmem:[%s1721_s3 + $0x8] sm:$0xf]  ;;  %v1312_v25 = vld [vmem:[%s1724_s5 + $0x10] sm:$0xff] }
   0x6   :  { %1732 = vst [vmem:[#allocation4_spill] sm:$0xff] %v1234_v9  ;;  %v1254_v13 = vld [vmem:[%s1721_s3 + $0x8] sm:$0xf0]  ;;  %v1259_v14 = vld [vmem:[%s1723_s4] sm:$0xf]  ;;  %v1317_v26 = vld [vmem:[%s1724_s5 + $0x18] sm:$0xff] }
   0x7   :  { %1733 = vst [vmem:[#allocation5_spill] sm:$0xff] %v1239_v10  ;;  %v1264_v15 = vld [vmem:[%s1723_s4] sm:$0xf0]  ;;  %v1269_v16 = vld [vmem:[%s1723_s4 + $0x8] sm:$0xf]  ;;  %v1335_v30 = vld [vmem:[%s1724_s5 + $0x30] sm:$0xff] }
   0x8   :  { %1734 = vst [vmem:[#allocation6_spill] sm:$0xff] %v1244_v11  ;;  %v1274_v17 = vld [vmem:[%s1723_s4 + $0x8] sm:$0xf0]  ;;  %v1289_v20 = vld [vmem:[%s1723_s4 + $0x18] sm:$0xf]  ;;  %v1299_v22 = vld [vmem:[%s1724_s5] sm:$0xff] }
   0x9   :  { %1735 = vst [vmem:[#allocation7_spill] sm:$0xff] %v1249_v12  ;;  %v1294_v21 = vld [vmem:[%s1723_s4 + $0x18] sm:$0xf0]  ;;  %v1307_v24 = vld [vmem:[%s1724_s5 + $0x8] sm:$0xff]  ;;  %v1325_v28 = vld [vmem:[%s1724_s5 + $0x20] sm:$0xff]  ;;  %v77_v34 = vand.u32 1, %v1319_v27 }
   0xa   :  { %1736 = vst [vmem:[#allocation8_spill] sm:$0xff] %v1254_v13  ;;  %v1330_v29 = vld [vmem:[%s1724_s5 + $0x28] sm:$0xff]  ;;  %v1341_v31 = vld [vmem:[%s1724_s5 + $0x38] sm:$0xff]  ;;  %v1346_v32 = vld [vmem:[%s1724_s5 + $0x40] sm:$0xff] }
   0xb   :  { %1737 = vst [vmem:[#allocation9_spill] sm:$0xff] %v1299_v22  ;;  %v1351_v33 = vld [vmem:[%s1724_s5 + $0x48] sm:$0xff]  ;;  %v1358_v35 = vld [vmem:[%s1724_s5 + $0x50] sm:$0xff]  ;;  %v1363_v36 = vld [vmem:[%s1724_s5 + $0x58] sm:$0xff]  ;;  %vm1385_vm3 = vcmp.eq.s32.totalorder %v77_v34, 0 }
   0xc   :  { %1738 = vst [vmem:[#allocation10_spill] sm:$0xff] %v1302_v23  ;;  %v1368_v37 = vld [vmem:[%s1724_s5 + $0x60] sm:$0xff]  ;;  %v1373_v38 = vld [vmem:[%s1724_s5 + $0x68] sm:$0xff]  ;;  %v1378_v39 = vld [vmem:[%s1724_s5 + $0x70] sm:$0xff] }
   0xd   :  { %1739 = vst [vmem:[#allocation11_spill] sm:$0xff] %v1307_v24  ;;  %v1383_v40 = vld [vmem:[%s1724_s5 + $0x78] sm:$0xff]  ;;  %v1392_v42 = vld [vmem:[%s1725_s6] sm:$0xff]  ;;  %v1397_v43 = vld [vmem:[%s1725_s6 + $0x8] sm:$0xff]  ;;  %s1403_s5 = smov 0  }
   0xe   :  { %1740 = vst [vmem:[#allocation12_spill] sm:$0xff] %v1312_v25 }
   0xf   :  { %1741 = vst [vmem:[#allocation13_spill] sm:$0xff] %v1317_v26 }
  0x10   :  { %1742 = vst [vmem:[#allocation14_spill] sm:$0xff] %v1319_v27 }
  0x11   :  { %1743 = vst [vmem:[#allocation15_spill] sm:$0xff] %v1325_v28 }
  0x12   :  { %1744 = vst [vmem:[#allocation16_spill] sm:$0xff] %v1330_v29 }
  0x13   :  { %1745 = vst [vmem:[#allocation17_spill] sm:$0xff] %v1335_v30 }
  0x14   :  { %1746 = vst [vmem:[#allocation18_spill] sm:$0xff] %v1341_v31 }
  0x15   :  { %1747 = vst [vmem:[#allocation19_spill] sm:$0xff] %v1346_v32 }
  0x16   :  { %1748 = vst [vmem:[#allocation20_spill] sm:$0xff] %v1351_v33 }
  0x17 LB: > { %v1751_v27 = vld [vmem:[#allocation14_spill] sm:$0xff]  ;;  %vm89_vm4 = vcmask 261120   ;;  %v87_v45 = vmul.f32 %v1147_v1, %v1147_v1  ;;  %v88_v47 = vmul.f32 %v1143_v2, %v1143_v2  ;;  %v1153_v50 = vmov 32.0   ;;  %v1757_v12 = vld [vmem:[#allocation7_spill] sm:$0xff]  ;;  %v1758_v13 = vld [vmem:[#allocation8_spill] sm:$0xff]  ;;  %s1155_s6 = smov 1   ;;  %v1143_v2 = vphi %v28_v2, %v1791_v2   ;;  %s1151_s5 = sphi %s1403_s5, %s84_s5   ;;  %v1147_v1 = vphi %v27_v1, %v1792_v1  }
  0x18   : > { %v90_v44 = vsel %vm89_vm4, %v1147_v1, 0.0  ;;  %v93_v48 = vsel %vm89_vm4, %v1143_v2, 0.0  ;;  %1077 = vrcp.f32 %v1153_v50  ;;  %v1752_v7 = vld [vmem:[#allocation2_spill] sm:$0xff]  ;;  %vm1754_vm2 = vcmp.lt.s32.totalorder %v1751_v27, 16  ;;  %v1759_v10 = vld [vmem:[#allocation5_spill] sm:$0xff]  ;;  %s1156_s19 = smov 127  }
  0x19   : > { %91 = vadd.xlane.f32.xlu0 %v90_v44  ;;  %v96_v46 = vsel %vm89_vm4, %v87_v45, 0.0  ;;  %v99_v49 = vsel %vm89_vm4, %v88_v47, 0.0  ;;  %vm1753_vm0 = vcmp.ne.s32.totalorder %v1752_v7, 0  ;;  %v1755_v23 = vld [vmem:[#allocation10_spill] sm:$0xff]  ;;  %v1764_v25 = vld [vmem:[#allocation12_spill] sm:$0xff]  ;;  %v1765_v26 = vld [vmem:[#allocation13_spill] sm:$0xff] }
  0x1a   : > { %97 = vadd.xlane.f32.xlu1 %v96_v46  ;;  %vm1756_vm1 = vcmp.ne.s32.totalorder %v1755_v23, 8  ;;  %v1760_v11 = vld [vmem:[#allocation6_spill] sm:$0xff]  ;;  %v1763_v30 = vld [vmem:[#allocation17_spill] sm:$0xff]  ;;  %v1768_v28 = vld [vmem:[#allocation15_spill] sm:$0xff]  ;;  %s1157_s20 = smov 64   ;;  %s84_s5 = sadd.s32 1, %s1151_s5  }
  0x1b   : > { %v1766_v31 = vld [vmem:[#allocation18_spill] sm:$0xff]  ;;  %v1767_v22 = vld [vmem:[#allocation9_spill] sm:$0xff]  ;;  %v1769_v29 = vld [vmem:[#allocation16_spill] sm:$0xff]  ;;  %p81_p0 = scmp.ge.s32.totalorder %s84_s5, 4  }
  0x1c   : > { %v1761_v32 = vld [vmem:[#allocation19_spill] sm:$0xff]  ;;  %v1772_v9 = vld [vmem:[#allocation4_spill] sm:$0xff] }
  0x1d   : > { %v1762_v33 = vld [vmem:[#allocation20_spill] sm:$0xff]  ;;  %v1770_v24 = vld [vmem:[#allocation11_spill] sm:$0xff] }
  0x1e   : > { %v1078_v51 = vpop.eup %1077  ;;  %v1771_v8 = vld [vmem:[#allocation3_spill] sm:$0xff] }
  0x1f   : > { %v103_v52 = vmul.f32 32.0, %v1078_v51  ;;  %vm107_vm5 = vweird.f32 %v1078_v51 }
  0x21   : > { %94 = vadd.xlane.f32.xlu0 %v93_v48  ;;  %v104_v53 = vsub.f32 1.0, %v103_v52 }
  0x22   : > { %100 = vadd.xlane.f32.xlu1 %v99_v49 }
  0x23   : > { %v105_v54 = vmul.f32 %v1078_v51, %v104_v53 }
  0x25   : > { %v106_v55 = vadd.f32 %v1078_v51, %v105_v54 }
  0x27   : > { %v108_v56 = vsel %vm107_vm5, %v1078_v51, %v106_v55 }
  0x8c   : > { %v92_v57 = vpop.xlane.xlu0 %91 }
  0x8d   : > { %v109_v58 = vmul.f32 %v108_v56, %v92_v57  ;;  %v98_v59 = vpop.xlane.xlu1 %97 }
  0x8e   : > { %v111_v61 = vmul.f32 %v108_v56, %v98_v59 }
  0x8f   : > { %v113_v60 = vmul.f32 %v109_v58, %v109_v58  ;;  %v117_v59 = vsub.f32 %v1147_v1, %v109_v58  ;;  %v158_v58 = vperm.slane %v1207_v3, 2 }
  0x91   : > { %v115_v62 = vsub.f32 %v111_v61, %v113_v60  ;;  %v143_v60 = vperm.slane %v1207_v3, 0 }
  0x93   : > { %v119_v63 = vadd.f32 1e-05, %v115_v62 }
  0x94   : > { %v95_v0 = vpop.xlane.xlu0 %94 }
  0x95   : > { %1079 = vrsqrt.f32 %v119_v63  ;;  %v110_v34 = vmul.f32 %v108_v56, %v95_v0  ;;  %v101_v44 = vpop.xlane.xlu1 %100  ;;  %vm127_vm7 = vweird.f32 %v119_v63  ;;  %v146_v0 = vperm.slane %v1207_v3, 1 }
  0x96   : > { %v112_v46 = vmul.f32 %v108_v56, %v101_v44 }
  0x97   : > { %v114_v45 = vmul.f32 %v110_v34, %v110_v34 }
  0x99   : > { %v116_v47 = vsub.f32 %v112_v46, %v114_v45 }
  0x9b   : > { %v1080_v48 = vpop.eup %1079  ;;  %v120_v49 = vadd.f32 1e-05, %v116_v47 }
  0x9c   : > { %v122_v50 = vmul.f32 %v1080_v48, %v119_v63  ;;  %vm128_vm6 = vweird.f32 %v1080_v48  ;;  %v118_v63 = vsub.f32 %v1143_v2, %v110_v34 }
  0x9d   : > { %1081 = vrsqrt.f32 %v120_v49  ;;  %vm129_vm8 = vmor %vm127_vm7, %vm128_vm6  ;;  %vm137_vm10 = vweird.f32 %v120_v49 }
  0x9e   : > { %v123_v52 = vmul.f32 %v1080_v48, %v122_v50 }
  0xa0   : > { %v124_v51 = vmul.f32 0.5, %v123_v52 }
  0xa2   : > { %v125_v53 = vsub.f32 1.5, %v124_v51 }
  0xa3   : > { %v1082_v54 = vpop.eup %1081 }
  0xa4   : > { %v126_v55 = vmul.f32 %v1080_v48, %v125_v53  ;;  %v132_v57 = vmul.f32 %v1082_v54, %v120_v49  ;;  %vm138_vm9 = vweird.f32 %v1082_v54 }
  0xa5   : > { %vm139_vm11 = vmor %vm137_vm10, %vm138_vm9 }
  0xa6   : > { %v130_v61 = vsel %vm129_vm8, %v1080_v48, %v126_v55  ;;  %v133_v56 = vmul.f32 %v1082_v54, %v132_v57 }
  0xa7   : > { %v141_v62 = vmul.f32 %v130_v61, %v117_v59 }
  0xa8   : > { %v134_v44 = vmul.f32 0.5, %v133_v56 }
  0xa9   : > { %v144_v45 = vmul.f32 %v143_v60, %v141_v62 }
  0xaa   : > { %v135_v46 = vsub.f32 1.5, %v134_v44 }
  0xab   : > { %v147_v47 = vadd.f32 %v146_v0, %v144_v45 }
  0xac   : > { %v136_v50 = vmul.f32 %v1082_v54, %v135_v46 }
  0xad   : > { %v149_v52 = vrot.slane %v147_v47, 7 }
  0xae   : > { %v140_v51 = vsel %vm139_vm11, %v1082_v54, %v136_v50 }
  0xaf   : > { %v151_v48 = vsel %vm1753_vm0, %v149_v52, 0.0  ;;  %v142_v53 = vmul.f32 %v140_v51, %v118_v63  ;;  %v934_v51 = vor.u32 %v1758_v13, %v1757_v12 }
  0xb0   : > { %v1433_v55 = vsel %vm1754_vm2, %v151_v48, %v147_v47 }
  0xb1   : > { %v159_v57 = vmul.f32 %v158_v58, %v1433_v55  ;;  %v145_v59 = vmul.f32 %v143_v60, %v142_v53  ;;  %v1154_v60 = vmov 15.0   ;;  %375 = vmatpush.bf16.msra.mxu1 %v934_v51 }
  0xb2   : > { %1083 = vrcp.f32 %v1154_v60 }
  0xb3   : > { %v163_v61 = vand.u32 2147483647, %v159_v57  ;;  %v148_v49 = vadd.f32 %v146_v0, %v145_v59 }
  0xb5   : > { %v171_v34 = vsel %vm89_vm4, %v163_v61, -inf  ;;  %v150_v56 = vrot.slane %v148_v49, 7 }
  0xb6   : > { %172 = vmax.xlane.f32.xlu2 %v171_v34 }
  0xb7   : > { %v152_v54 = vsel %vm1756_vm1, %v150_v56, 0.0 }
  0xb8   : > { %v1441_v62 = vsel %vm1754_vm2, %v152_v54, %v148_v49  ;;  %v1084_v0 = vpop.eup %1083 }
  0xb9   : > { %v160_v44 = vmul.f32 %v158_v58, %v1441_v62  ;;  %v178_v47 = vmul.f32 15.0, %v1084_v0  ;;  %vm182_vm12 = vweird.f32 %v1084_v0  ;;  %v930_v58 = vor.u32 %v1760_v11, %v1759_v10 }
  0xbb   : > { %v164_v45 = vand.u32 2147483647, %v160_v44  ;;  %v179_v50 = vsub.f32 1.0, %v178_v47  ;;  %376 = vmatpush.bf16.msra.mxu1 %v930_v58 }
  0xbd   : > { %v174_v46 = vsel %vm89_vm4, %v164_v45, -inf  ;;  %v180_v63 = vmul.f32 %v1084_v0, %v179_v50 }
  0xbe   : > { %175 = vmax.xlane.f32.xlu2 %v174_v46 }
  0xbf   : > { %v181_v52 = vadd.f32 %v1084_v0, %v180_v63 }
  0xc1   : > { %v1447_v48 = vsel %vm182_vm12, %v1084_v0, %v181_v52 }
 0x129   : > { %v173_v53 = vpop.xlane.xlu2 %172 }
 0x12a   : > { %v1452_v59 = vmul.f32 %v1447_v48, %v173_v53 }
 0x12c   : > { %vm190_vm13 = vcmp.eq.f32.partialorder %v1452_v59, 0.0 }
 0x12d   : > { %v194_v61 = vsel %vm190_vm13, 1.0, %v1452_v59 }
 0x12e   : > { %1085 = vrcp.f32 %v194_v61  ;;  %v237_v60 = vand.u32 2147483648, %v194_v61  ;;  %v235_v47 = vand.u32 2147483647, %v194_v61  ;;  %vm231_vm5 = vweird.f32 %v194_v61 }
 0x130   : > { %v238_v52 = vor.u32 1.1754944e-38, %v237_v60  ;;  %vm236_vm7 = vcmp.eq.f32.partialorder %v235_v47, 8.507059e+37 }
 0x131   : > { %v176_v49 = vpop.xlane.xlu2 %175 }
 0x132   : > { %v1457_v34 = vmul.f32 %v1447_v48, %v176_v49 }
 0x134   : > { %v1086_v56 = vpop.eup %1085  ;;  %vm191_vm14 = vcmp.eq.f32.partialorder %v1457_v34, 0.0 }
 0x135   : > { %v227_v54 = vmul.f32 %v1086_v56, %v194_v61  ;;  %v195_v45 = vsel %vm191_vm14, 1.0, %v1457_v34  ;;  %vm232_vm15 = vweird.f32 %v1086_v56 }
 0x136   : > { %1087 = vrcp.f32 %v195_v45  ;;  %vm233_vm6 = vmor %vm231_vm5, %vm232_vm15  ;;  %v252_v10 = vand.u32 2147483648, %v195_v45  ;;  %v250_v12 = vand.u32 2147483647, %v195_v45  ;;  %vm246_vm9 = vweird.f32 %v195_v45 }
 0x137   : > { %v228_v46 = vsub.f32 1.0, %v227_v54 }
 0x138   : > { %vm251_vm11 = vcmp.eq.f32.partialorder %v250_v12, 8.507059e+37 }
 0x139   : > { %v229_v0 = vmul.f32 %v1086_v56, %v228_v46  ;;  %v253_v46 = vor.u32 1.1754944e-38, %v252_v10  ;;  %v353_v10 = vperm.slane %v1212_v4, 0 }
 0x13b   : > { %v230_v50 = vadd.f32 %v1086_v56, %v229_v0 }
 0x13c   : > { %v1088_v63 = vpop.eup %1087 }
 0x13d   : > { %v234_v51 = vsel %vm233_vm6, %v1086_v56, %v230_v50  ;;  %v242_v58 = vmul.f32 %v1088_v63, %v195_v45  ;;  %vm247_vm8 = vweird.f32 %v1088_v63 }
 0x13e   : > { %v239_v53 = vsel %vm236_vm7, %v238_v52, %v234_v51  ;;  %vm248_vm10 = vmor %vm246_vm9, %vm247_vm8 }
 0x13f   : > { %v243_v49 = vsub.f32 1.0, %v242_v58  ;;  %v258_v7 = vmul.f32 %v239_v53, %v159_v57 }
 0x141   : > { %v244_v11 = vmul.f32 %v1088_v63, %v243_v49  ;;  %v914_v54 = vclamps-f32 %v258_v7, 15.0 }
 0x143   : > { %v245_v13 = vadd.f32 %v1088_v63, %v244_v11  ;;  %v989_v61 = vceil.f32 %v914_v54  ;;  %v990_v23 = vfloor.f32 %v914_v54  ;;  %vm988_vm12 = vcmp.lt.s32.totalorder %v914_v54, 0 }
 0x145   : > { %v249_v0 = vsel %vm248_vm10, %v1088_v63, %v245_v13  ;;  %v991_v50 = vsel %vm988_vm12, %v989_v61, %v990_v23  ;;  %vm592_vm12 = vcmask 7168  }
 0x146   : > { %v254_v60 = vsel %vm251_vm11, %v253_v46, %v249_v0  ;;  %v992_v51 = vcvt.f32.s32 %v991_v50 }
 0x147   : > { %v259_v56 = vmul.f32 %v254_v60, %v160_v44 }
 0x148   : > { %v274_v7 = vcvt.s32.f32 %v992_v51  ;;  %v423_v51 = vperm.slane %v1207_v3, 6 }
 0x149   : > { %v915_v47 = vclamps-f32 %v259_v56, 15.0 }
 0x14b   : > { %vm993_vm13 = vcmp.lt.s32.totalorder %v915_v47, 0  ;;  %v994_v57 = vceil.f32 %v915_v47  ;;  %v995_v52 = vfloor.f32 %v915_v47 }
 0x14d   : > { %v996_v58 = vsel %vm993_vm13, %v994_v57, %v995_v52 }
 0x14e   : > { %v997_v53 = vcvt.f32.s32 %v996_v58 }
 0x150   : > { %v275_v11 = vcvt.s32.f32 %v997_v53 }
 0x152   : > { %v352_v45 = vpack.c.bf16 %v275_v11, %v274_v7 }
 0x154   : > { %935 = vmatmul.msk.bf16.vlgmr.msra.gmra.mxu1 %vm89_vm4, %v352_v45 }
 0x1d1   : > { %v378_v12 = vpop.f32.mrf.mxu1 }
 0x1d2   : > { %v379_v13 = vadd.f32 %v378_v12, %v353_v10  ;;  %v424_v12 = vmul.f32 %v423_v51, %v1452_v59  ;;  %v425_v59 = vmul.f32 %v423_v51, %v1457_v34 }
 0x1d4   : > { %v936_v63 = vmul.f32 -1.442695, %v379_v13 }
 0x1d6   : > { %1089 = vpow2.f32 %v936_v63 }
 0x1d9   : > { %v380_v44 = vpop.f32.mrf.mxu1 }
 0x1da   : > { %v381_v49 = vadd.f32 %v380_v44, %v353_v10 }
 0x1dc   : > { %v1090_v23 = vpop.eup %1089  ;;  %v937_v54 = vmul.f32 -1.442695, %v381_v49 }
 0x1dd   : > { %v389_v46 = vadd.f32 1.0, %v1090_v23 }
 0x1de   : > { %1091 = vpow2.f32 %v937_v54 }
 0x1df   : > { %1093 = vrcp.f32 %v389_v46  ;;  %v402_v50 = vand.u32 2147483648, %v389_v46  ;;  %v400_v52 = vand.u32 2147483647, %v389_v46  ;;  %vm396_vm15 = vweird.f32 %v389_v46 }
 0x1e1   : > { %v403_v7 = vor.u32 1.1754944e-38, %v402_v50  ;;  %vm401_vm6 = vcmp.eq.f32.partialorder %v400_v52, 8.507059e+37 }
 0x1e4   : > { %v1092_v0 = vpop.eup %1091 }
 0x1e5   : > { %v1094_v61 = vpop.eup %1093  ;;  %v390_v60 = vadd.f32 1.0, %v1092_v0 }
 0x1e6   : > { %v392_v56 = vmul.f32 %v1094_v61, %v389_v46  ;;  %vm397_vm14 = vweird.f32 %v1094_v61 }
 0x1e7   : > { %1095 = vrcp.f32 %v390_v60  ;;  %vm398_vm5 = vmor %vm396_vm15, %vm397_vm14  ;;  %v417_v23 = vand.u32 2147483648, %v390_v60  ;;  %vm411_vm8 = vweird.f32 %v390_v60 }
 0x1e8   : > { %v393_v47 = vsub.f32 1.0, %v392_v56  ;;  %v415_v56 = vand.u32 2147483647, %v390_v60 }
 0x1ea   : > { %v394_v57 = vmul.f32 %v1094_v61, %v393_v47  ;;  %vm416_vm10 = vcmp.eq.f32.partialorder %v415_v56, 8.507059e+37 }
 0x1ec   : > { %v395_v58 = vadd.f32 %v1094_v61, %v394_v57  ;;  %v418_v57 = vor.u32 1.1754944e-38, %v417_v23 }
 0x1ed   : > { %v1096_v53 = vpop.eup %1095 }
 0x1ee   : > { %v399_v11 = vsel %vm398_vm5, %v1094_v61, %v395_v58  ;;  %v407_v45 = vmul.f32 %v1096_v53, %v390_v60  ;;  %vm412_vm7 = vweird.f32 %v1096_v53 }
 0x1ef   : > { %v404_v10 = vsel %vm401_vm6, %v403_v7, %v399_v11  ;;  %vm413_vm9 = vmor %vm411_vm8, %vm412_vm7 }
 0x1f0   : > { %v421_v63 = vmul.f32 %v404_v10, %v379_v13  ;;  %v408_v44 = vsub.f32 1.0, %v407_v45 }
 0x1f2   : > { %v426_v54 = vmul.f32 %v424_v12, %v421_v63  ;;  %v409_v0 = vmul.f32 %v1096_v53, %v408_v44 }
 0x1f4   : > { %v410_v47 = vadd.f32 %v1096_v53, %v409_v0  ;;  %v430_v46 = vmul.f32 %v426_v54, %v1358_v35  ;;  %v428_v7 = vmul.f32 %v426_v54, %v1761_v32 }
 0x1f6   : > { %v414_v50 = vsel %vm413_vm9, %v1096_v53, %v410_v47  ;;  %v434_v61 = vadd.f32 %v430_v46, %v1378_v39  ;;  %v432_v53 = vadd.f32 %v428_v7, %v1368_v37 }
 0x1f7   : > { %v419_v52 = vsel %vm416_vm10, %v418_v57, %v414_v50 }
 0x1f8   : > { %v422_v13 = vmul.f32 %v419_v52, %v381_v49  ;;  %440 = vrot.lane.b32.xlu2 %v434_v61, %s1155_s6  ;;  %448 = vrot.lane.b32.xlu0 %v434_v61, %s1156_s19  ;;  %v462_v44 = vmul.f32 %v434_v61, %v1764_v25 }
 0x1fa   : > { %v427_v58 = vmul.f32 %v425_v59, %v422_v13  ;;  %v155_v59 = vperm.slane %v1207_v3, 3 }
 0x1fc   : > { %v431_v60 = vmul.f32 %v427_v58, %v1363_v36  ;;  %v429_v45 = vmul.f32 %v427_v58, %v1762_v33 }
 0x1fe   : > { %v435_v11 = vadd.f32 %v431_v60, %v1383_v40  ;;  %v433_v34 = vadd.f32 %v429_v45, %v1373_v38 }
 0x200   : > { %450 = vrot.lane.b32.xlu1 %v435_v11, %s1156_s19  ;;  %442 = vrot.lane.b32.xlu0 %v435_v11, %s1155_s6  ;;  %v463_v50 = vmul.f32 %v435_v11, %v1765_v26  ;;  %v460_v11 = vmul.f32 %v432_v53, %v1767_v22 }
 0x201   : > { %444 = vrot.lane.b32.xlu2 %v432_v53, %s1156_s19 }
 0x208   : > { %446 = vrot.lane.b32.xlu1 %v433_v34, %s1156_s19  ;;  %436 = vrot.lane.b32.xlu0 %v432_v53, %s1155_s6  ;;  %v1507_v53 = vmul.f32 %v155_v59, %v1441_v62 }
 0x209   : > { %438 = vrot.lane.b32.xlu2 %v433_v34, %s1155_s6 }
 0x252   : > { %v441_v49 = vpop.permute.xlu2 %440 }
 0x25b   : > { %v445_v54 = vpop.permute.xlu2 %444 }
 0x25c   : > { %v452_v61 = vsub.f32 0.0, %v445_v54 }
 0x26a   : > { %v449_v51 = vpop.permute.xlu0 %448 }
 0x26b   : > { %v454_v10 = vsub.f32 0.0, %v449_v51  ;;  %v1492_v51 = vmul.f32 %v155_v59, %v1433_v55 }
 0x26d   : > { %v458_v12 = vsel %vm1385_vm3, %v454_v10, %v441_v49  ;;  %v439_v10 = vpop.permute.xlu2 %438 }
 0x26e   : > { %v466_v63 = vmul.f32 %v458_v12, %v1763_v30 }
 0x270   : > { %v1478_v23 = vadd.f32 %v466_v63, %v462_v44 }
 0x272   : > { %v451_v0 = vpop.permute.xlu1 %450  ;;  %v443_v56 = vpop.permute.xlu0 %442  ;;  %v474_v47 = vand.u32 2147483647, %v1478_v23 }
 0x273   : > { %v455_v46 = vsub.f32 0.0, %v451_v0  ;;  %v461_v0 = vmul.f32 %v433_v34, %v1770_v24 }
 0x274   : > { %480 = vmax.xlane.f32.xlu1 %v474_v47 }
 0x275   : > { %v459_v57 = vsel %vm1385_vm3, %v455_v46, %v443_v56  ;;  %v161_v56 = vand.u32 2147483647, %v1492_v51 }
 0x276   : > { %v467_v52 = vmul.f32 %v459_v57, %v1766_v31 }
 0x277   : > { %v165_v57 = vsel %vm89_vm4, %v161_v56, -inf }
 0x278   : > { %v1486_v13 = vadd.f32 %v467_v52, %v463_v50  ;;  %v162_v50 = vand.u32 2147483647, %v1507_v53 }
 0x27a   : > { %v447_v58 = vpop.permute.xlu1 %446  ;;  %v437_v7 = vpop.permute.xlu0 %436  ;;  %v475_v60 = vand.u32 2147483647, %v1486_v13  ;;  %v168_v34 = vsel %vm89_vm4, %v162_v50, -inf }
 0x27b   : > { %v453_v45 = vsub.f32 0.0, %v447_v58  ;;  %v456_v49 = vsel %vm1385_vm3, %v452_v61, %v437_v7 }
 0x27c   : > { %v464_v12 = vmul.f32 %v456_v49, %v1768_v28  ;;  %482 = vmax.xlane.f32.xlu0 %v475_v60 }
 0x27d   : > { %v457_v63 = vsel %vm1385_vm3, %v453_v45, %v439_v10 }
 0x27e   : > { %v465_v44 = vmul.f32 %v457_v63, %v1769_v29  ;;  %v1499_v54 = vadd.f32 %v464_v12, %v460_v11  ;;  %v923_v11 = vor.u32 %v1772_v9, %v1771_v8 }
 0x280   : > { %v472_v55 = vand.u32 2147483647, %v1499_v54  ;;  %v1504_v47 = vadd.f32 %v465_v44, %v461_v0  ;;  %299 = vmatpush.bf16.msra.mxu0 %v923_v11 }
 0x282   : > { %476 = vmax.xlane.f32.xlu2 %v472_v55  ;;  %v473_v46 = vand.u32 2147483647, %v1504_v47 }
 0x284   : > { %166 = vmax.xlane.f32.xlu0 %v165_v57  ;;  %478 = vmax.xlane.f32.xlu1 %v473_v46 }
 0x28a   : > { %169 = vmax.xlane.f32.xlu2 %v168_v34 }
 0x2e7   : > { %v481_v52 = vpop.xlane.xlu1 %480 }
 0x2e8   : > { %v486_v61 = vmul.f32 %v481_v52, %v1447_v48 }
 0x2ea   : > { %vm490_vm11 = vcmp.eq.f32.partialorder %v486_v61, 0.0 }
 0x2eb   : > { %v494_v58 = vsel %vm490_vm11, 1.0, %v486_v61 }
 0x2ec   : > { %1097 = vrcp.f32 %v494_v58  ;;  %v535_v63 = vand.u32 2147483647, %v494_v58  ;;  %v537_v44 = vand.u32 2147483648, %v494_v58  ;;  %vm531_vm15 = vweird.f32 %v494_v58 }
 0x2ee   : > { %vm1532_vm5 = vcmp.eq.f32.partialorder %v535_v63, 8.507059e+37 }
 0x2ef   : > { %v483_v62 = vpop.xlane.xlu0 %482 }
 0x2f0   : > { %v487_v59 = vmul.f32 %v483_v62, %v1447_v48  ;;  %v538_v62 = vor.u32 1.1754944e-38, %v537_v44 }
 0x2f2   : > { %v1515_v7 = vpop.eup %1097  ;;  %vm491_vm13 = vcmp.eq.f32.partialorder %v487_v59, 0.0  ;;  %942 = vmatpush.xpose.msk.msra.mxu3 %vm592_vm12, %v487_v59 }
 0x2f3   : > { %v527_v60 = vmul.f32 %v1515_v7, %v494_v58  ;;  %v495_v45 = vsel %vm491_vm13, 1.0, %v487_v59  ;;  %vm532_vm7 = vweird.f32 %v1515_v7 }
 0x2f4   : > { %1099 = vrcp.f32 %v495_v45  ;;  %v550_v52 = vand.u32 2147483647, %v495_v45  ;;  %vm546_vm9 = vweird.f32 %v495_v45  ;;  %v552_v11 = vand.u32 2147483648, %v495_v45  ;;  %vm1554_vm11 = vmor %vm531_vm15, %vm532_vm7 }
 0x2f5   : > { %v528_v49 = vsub.f32 1.0, %v527_v60  ;;  %v477_v10 = vpop.xlane.xlu2 %476 }
 0x2f6   : > { %v484_v12 = vmul.f32 %v477_v10, %v1447_v48  ;;  %943 = vmatpush.xpose.msk.msra.mxu3 %vm592_vm12, %v486_v61  ;;  %vm1543_vm10 = vcmp.eq.f32.partialorder %v550_v52, 8.507059e+37  ;;  %v553_v26 = vor.u32 1.1754944e-38, %v552_v11 }
 0x2f7   : > { %v167_v0 = vpop.xlane.xlu0 %166  ;;  %v479_v56 = vpop.xlane.xlu1 %478  ;;  %v529_v55 = vmul.f32 %v1515_v7, %v528_v49 }
 0x2f8   : > { %vm488_vm14 = vcmp.eq.f32.partialorder %v484_v12, 0.0  ;;  %v1525_v46 = vmul.f32 %v1447_v48, %v167_v0  ;;  %v485_v57 = vmul.f32 %v479_v56, %v1447_v48 }
 0x2f9   : > { %v1528_v50 = vsel %vm488_vm14, 1.0, %v484_v12  ;;  %944 = vmatmul.msk.f32.vlgmr.msra.gmra.mxu3 %vm592_vm12, %v484_v12  ;;  %v530_v60 = vadd.f32 %v1515_v7, %v529_v55 }
 0x2fa   : > { %v1100_v34 = vpop.eup %1099  ;;  %1101 = vrcp.f32 %v1528_v50  ;;  %vm188_vm6 = vcmp.eq.f32.partialorder %v1525_v46, 0.0  ;;  %vm489_vm8 = vcmp.eq.f32.partialorder %v485_v57, 0.0  ;;  %v505_v44 = vand.u32 2147483647, %v1528_v50 }
 0x2fb   : > { %v542_v59 = vmul.f32 %v1100_v34, %v495_v45  ;;  %v1540_v49 = vsel %vm188_vm6, 1.0, %v1525_v46  ;;  %v1548_v0 = vsel %vm489_vm8, 1.0, %v485_v57  ;;  %v507_v8 = vand.u32 2147483648, %v1528_v50 }
 0x2fc   : > { %1103 = vrcp.f32 %v1540_v49  ;;  %v207_v52 = vand.u32 2147483648, %v1540_v49  ;;  %vm547_vm13 = vweird.f32 %v1100_v34  ;;  %v205_v22 = vand.u32 2147483647, %v1540_v49 }
 0x2fd   : > { %v543_v10 = vsub.f32 1.0, %v542_v59  ;;  %v170_v12 = vpop.xlane.xlu2 %169  ;;  %1105 = vrcp.f32 %v1548_v0  ;;  %v534_v58 = vsel %vm1554_vm11, %v1515_v7, %v530_v60  ;;  %v522_v24 = vand.u32 2147483648, %v1548_v0  ;;  %vm1579_vm6 = vmor %vm546_vm9, %vm547_vm13 }
 0x2fe   : > { %v1551_v56 = vmul.f32 %v1447_v48, %v170_v12  ;;  %vm501_vm15 = vweird.f32 %v1528_v50  ;;  %v520_v27 = vand.u32 2147483647, %v1548_v0  ;;  %vm1583_vm7 = vcmp.eq.f32.partialorder %v505_v44, 8.507059e+37 }
 0x2ff   : > { %v544_v59 = vmul.f32 %v1100_v34, %v543_v10  ;;  %v508_v28 = vor.u32 1.1754944e-38, %v507_v8  ;;  %vm1590_vm11 = vcmp.eq.f32.partialorder %v205_v22, 8.507059e+37  ;;  %vm516_vm9 = vweird.f32 %v1548_v0 }
 0x300   : > { %v1561_v9 = vpop.eup %1101  ;;  %vm189_vm14 = vcmp.eq.f32.partialorder %v1551_v56, 0.0  ;;  %v539_v45 = vsel %vm1532_vm5, %v538_v62, %v534_v58  ;;  %vm1604_vm13 = vcmp.eq.f32.partialorder %v520_v27, 8.507059e+37 }
 0x301   : > { %v545_v12 = vadd.f32 %v1100_v34, %v544_v59  ;;  %v497_v10 = vmul.f32 %v1561_v9, %v1528_v50  ;;  %v1572_v25 = vsel %vm189_vm14, 1.0, %v1551_v56  ;;  %945 = vmatmul.msk.f32.gmra.mxu3 %vm592_vm12, %v485_v57  ;;  %vm201_vm12 = vweird.f32 %v1540_v49 }
 0x302   : > { %1107 = vrcp.f32 %v1572_v25  ;;  %v1104_v55 = vpop.eup %1103  ;;  %v208_v57 = vor.u32 1.1754944e-38, %v207_v52  ;;  %vm502_vm8 = vweird.f32 %v1561_v9  ;;  %v523_v52 = vor.u32 1.1754944e-38, %v522_v24 }
 0x303   : > { %v498_v60 = vsub.f32 1.0, %v497_v10  ;;  %v197_v11 = vmul.f32 %v1104_v55, %v1540_v49  ;;  %v549_v44 = vsel %vm1579_vm6, %v1100_v34, %v545_v12  ;;  %v1106_v8 = vpop.eup %1105  ;;  %v220_v30 = vand.u32 2147483647, %v1572_v25 }
 0x304   : > { %v554_v22 = vsel %vm1543_vm10, %v553_v26, %v549_v44  ;;  %v512_v32 = vmul.f32 %v1106_v8, %v1548_v0  ;;  %v222_v61 = vand.u32 2147483648, %v1572_v25  ;;  %v558_v34 = vmul.f32 %v539_v45, %v1478_v23  ;;  %vm1619_vm10 = vmor %vm501_vm15, %vm502_vm8 }
 0x305   : > { %v499_v10 = vmul.f32 %v1561_v9, %v498_v60  ;;  %v198_v31 = vsub.f32 1.0, %v197_v11  ;;  %vm202_vm5 = vweird.f32 %v1104_v55  ;;  %vm216_vm14 = vweird.f32 %v1572_v25 }
 0x306   : > { %v559_v24 = vmul.f32 %v554_v22, %v1486_v13  ;;  %v919_v26 = vor.u32 %v1222_v6, %v1217_v5  ;;  %v513_v58 = vsub.f32 1.0, %v512_v32  ;;  %vm517_vm6 = vweird.f32 %v1106_v8  ;;  %vm203_vm8 = vmor %vm201_vm12, %vm202_vm5 }
 0x307   : > { %v500_v62 = vadd.f32 %v1561_v9, %v499_v10  ;;  %v199_v23 = vmul.f32 %v1104_v55, %v198_v31  ;;  %v940_v12 = vclamps-f32 %v558_v34, 15.0  ;;  %vm1627_vm1 = vcmp.eq.f32.partialorder %v220_v30, 8.507059e+37  ;;  %vm518_vm2 = vmor %vm516_vm9, %vm517_vm6 }
 0x308   : > { %v1108_v63 = vpop.eup %1107  ;;  %v941_v50 = vclamps-f32 %v559_v24, 15.0  ;;  %300 = vmatpush.bf16.msra.mxu0 %v919_v26  ;;  %v514_v45 = vmul.f32 %v1106_v8, %v513_v58  ;;  %v223_v0 = vor.u32 1.1754944e-38, %v222_v61 }
 0x309   : > { %v504_v13 = vsel %vm1619_vm10, %v1561_v9, %v500_v62  ;;  %v212_v7 = vmul.f32 %v1108_v63, %v1572_v25  ;;  %vm217_vm0 = vweird.f32 %v1108_v63  ;;  %v200_v11 = vadd.f32 %v1104_v55, %v199_v23 }
 0x30a   : > { %vm1008_vm15 = vcmp.lt.s32.totalorder %v940_v12, 0  ;;  %v1009_v31 = vceil.f32 %v940_v12  ;;  %v1010_v44 = vfloor.f32 %v940_v12  ;;  %vm1013_vm10 = vcmp.lt.s32.totalorder %v941_v50, 0 }
 0x30b   : > { %v213_v32 = vsub.f32 1.0, %v212_v7  ;;  %v1014_v9 = vceil.f32 %v941_v50  ;;  %v204_v10 = vsel %vm203_vm8, %v1104_v55, %v200_v11  ;;  %v515_v22 = vadd.f32 %v1106_v8, %v514_v45 }
 0x30c   : > { %v1015_v30 = vfloor.f32 %v941_v50  ;;  %v509_v34 = vsel %vm1583_vm7, %v508_v28, %v504_v13  ;;  %v209_v62 = vsel %vm1590_vm11, %v208_v57, %v204_v10  ;;  %v1011_v49 = vsel %vm1008_vm15, %v1009_v31, %v1010_v44  ;;  %vm218_vm7 = vmor %vm216_vm14, %vm217_vm0 }
 0x30d   : > { %v214_v24 = vmul.f32 %v1108_v63, %v213_v32  ;;  %v556_v26 = vmul.f32 %v509_v34, %v1499_v54  ;;  %v519_v27 = vsel %vm518_vm2, %v1106_v8, %v515_v22  ;;  %v1012_v23 = vcvt.f32.s32 %v1011_v49 }
 0x30e   : > { %v1016_v58 = vsel %vm1013_vm10, %v1014_v9, %v1015_v30  ;;  %v256_v55 = vmul.f32 %v209_v62, %v1492_v51  ;;  %v524_v28 = vsel %vm1604_vm13, %v523_v52, %v519_v27  ;;  %vm692_vm15 = vcmask 523264  }
 0x30f   : > { %v215_v12 = vadd.f32 %v1108_v63, %v214_v24  ;;  %v1017_v7 = vcvt.f32.s32 %v1016_v58  ;;  %v938_v29 = vclamps-f32 %v556_v26, 15.0  ;;  %v574_v59 = vcvt.s32.f32 %v1012_v23 }
 0x310   : > { %v557_v57 = vmul.f32 %v524_v28, %v1504_v47  ;;  %v912_v54 = vclamps-f32 %v256_v55, 15.0  ;;  %v277_v55 = vperm.slane %v1207_v3, 7 }
 0x311   : > { %v219_v8 = vsel %vm218_vm7, %v1108_v63, %v215_v12  ;;  %v575_v13 = vcvt.s32.f32 %v1017_v7  ;;  %vm998_vm2 = vcmp.lt.s32.totalorder %v938_v29, 0  ;;  %v999_v50 = vceil.f32 %v938_v29 }
 0x312   : > { %v224_v51 = vsel %vm1627_vm1, %v223_v0, %v219_v8  ;;  %v939_v11 = vclamps-f32 %v557_v57, 15.0  ;;  %v1000_v33 = vfloor.f32 %v938_v29  ;;  %vm978_vm12 = vcmp.lt.s32.totalorder %v912_v54, 0 }
 0x313   : > { %v577_v52 = vpack.c.bf16 %v575_v13, %v574_v59  ;;  %v257_v45 = vmul.f32 %v224_v51, %v1507_v53  ;;  %v979_v25 = vceil.f32 %v912_v54  ;;  %v980_v31 = vfloor.f32 %v912_v54 }
 0x314   : > { %v1001_v61 = vsel %vm998_vm2, %v999_v50, %v1000_v33  ;;  %vm1003_vm0 = vcmp.lt.s32.totalorder %v939_v11, 0  ;;  %v1004_v32 = vceil.f32 %v939_v11  ;;  %v1005_v47 = vfloor.f32 %v939_v11 }
 0x315   : > { %585 = vmatpush.bf16.xpose.msra.mxu2 %v577_v52  ;;  %v1002_v63 = vcvt.f32.s32 %v1001_v61  ;;  %v913_v44 = vclamps-f32 %v257_v45, 15.0  ;;  %v981_v10 = vsel %vm978_vm12, %v979_v25, %v980_v31  ;;  %vm640_vm1 = vcmask 130048  }
 0x316   : > { %v1006_v9 = vsel %vm1003_vm0, %v1004_v32, %v1005_v47  ;;  %v982_v24 = vcvt.f32.s32 %v981_v10 }
 0x317   : > { %v1007_v22 = vcvt.f32.s32 %v1006_v9  ;;  %vm983_vm11 = vcmp.lt.s32.totalorder %v913_v44, 0  ;;  %v984_v60 = vceil.f32 %v913_v44  ;;  %v985_v30 = vfloor.f32 %v913_v44 }
 0x318   : > { %v572_v34 = vcvt.s32.f32 %v1002_v63  ;;  %v272_v27 = vcvt.s32.f32 %v982_v24 }
 0x319   : > { %v573_v62 = vcvt.s32.f32 %v1007_v22  ;;  %v986_v49 = vsel %vm983_vm11, %v984_v60, %v985_v30 }
 0x31a   : > { %v987_v26 = vcvt.f32.s32 %v986_v49 }
 0x31b   : > { %v576_v53 = vpack.c.bf16 %v573_v62, %v572_v34 }
 0x31c   : > { %v273_v23 = vcvt.s32.f32 %v987_v26 }
 0x31d   : > { %586 = vmatmul.bf16.vlgmr.msra.gmra.mxu2 %v576_v53 }
 0x31e   : > { %v276_v58 = vpack.c.bf16 %v273_v23, %v272_v27  ;;  %v347_v27 = vperm.slane %v1207_v3, 5 }
 0x320   : > { %924 = vmatmul.msk.bf16.vlgmr.msra.gmra.mxu0 %vm89_vm4, %v276_v58 }
 0x37c   : > { %v622_v12 = vpop.f32.mrf.mxu3 }
 0x384   : > { %v625_v51 = vpop.f32.mrf.mxu3 }
 0x39d   : > { %v302_v7 = vpop.f32.mrf.mxu0 }
 0x39e   : > { %v303_v28 = vadd.f32 %v302_v7, %v277_v55 }
 0x3a0   : > { %v587_v29 = vpop.f32.mrf.mxu2  ;;  %v925_v0 = vmul.f32 -1.442695, %v303_v28 }
 0x3a1   : > { %v628_v59 = vmul.f32 %v622_v12, %v587_v29 }
 0x3a2   : > { %1109 = vpow2.f32 %v925_v0  ;;  %v348_v0 = vmul.f32 %v347_v27, %v1525_v46 }
 0x3a3   : > { %v630_v57 = vadd.f32 %v628_v59, %v1392_v42 }
 0x3a5   : > { %v632_v54 = vmul.f32 0.125, %v630_v57  ;;  %v304_v8 = vpop.f32.mrf.mxu0 }
 0x3a6   : > { %v1655_v50 = vadd.f32 %v304_v8, %v277_v55 }
 0x3a7   : > { %v634_v13 = vmax.f32 %v632_v54, 0.0 }
 0x3a8   : > { %v589_v11 = vpop.f32.mrf.mxu2  ;;  %v1110_v33 = vpop.eup %1109  ;;  %v926_v45 = vmul.f32 -1.442695, %v1655_v50 }
 0x3a9   : > { %v1657_v52 = vmul.f32 %v634_v13, %v634_v13  ;;  %v629_v25 = vmul.f32 %v625_v51, %v589_v11  ;;  %v313_v31 = vadd.f32 1.0, %v1110_v33 }
 0x3aa   : > { %1111 = vpow2.f32 %v926_v45 }
 0x3ab   : > { %v631_v61 = vadd.f32 %v629_v25, %v1397_v43  ;;  %v638_v32 = vand.u32 2147483647, %v1657_v52  ;;  %1113 = vrcp.f32 %v313_v31  ;;  %v326_v49 = vand.u32 2147483648, %v313_v31 }
 0x3ac   : > { %v324_v26 = vand.u32 2147483647, %v313_v31  ;;  %vm320_vm13 = vweird.f32 %v313_v31 }
 0x3ad   : > { %v633_v47 = vmul.f32 0.125, %v631_v61  ;;  %v641_v63 = vsel %vm640_vm1, %v638_v32, -inf  ;;  %v327_v55 = vor.u32 1.1754944e-38, %v326_v49  ;;  %v349_v61 = vmul.f32 %v347_v27, %v1551_v56 }
 0x3ae   : > { %642 = vmax.xlane.f32.xlu1 %v641_v63  ;;  %vm325_vm14 = vcmp.eq.f32.partialorder %v324_v26, 8.507059e+37 }
 0x3af   : > { %v635_v44 = vmax.f32 %v633_v47, 0.0 }
 0x3b0   : > { %v1112_v9 = vpop.eup %1111 }
 0x3b1   : > { %v1663_v10 = vmul.f32 %v635_v44, %v635_v44  ;;  %v1114_v22 = vpop.eup %1113  ;;  %v314_v60 = vadd.f32 1.0, %v1112_v9 }
 0x3b2   : > { %v316_v30 = vmul.f32 %v1114_v22, %v313_v31  ;;  %vm321_vm9 = vweird.f32 %v1114_v22 }
 0x3b3   : > { %v639_v34 = vand.u32 2147483647, %v1663_v10  ;;  %1115 = vrcp.f32 %v314_v60  ;;  %vm322_vm5 = vmor %vm320_vm13, %vm321_vm9  ;;  %v341_v54 = vand.u32 2147483648, %v314_v60  ;;  %v339_v13 = vand.u32 2147483647, %v314_v60 }
 0x3b4   : > { %v317_v62 = vsub.f32 1.0, %v316_v30  ;;  %vm335_vm8 = vweird.f32 %v314_v60 }
 0x3b5   : > { %v644_v24 = vsel %vm640_vm1, %v639_v34, -inf  ;;  %v342_v45 = vor.u32 1.1754944e-38, %v341_v54  ;;  %vm340_vm7 = vcmp.eq.f32.partialorder %v339_v13, 8.507059e+37 }
 0x3b6   : > { %645 = vmax.xlane.f32.xlu0 %v644_v24  ;;  %v318_v53 = vmul.f32 %v1114_v22, %v317_v62 }
 0x3b8   : > { %v319_v23 = vadd.f32 %v1114_v22, %v318_v53 }
 0x3b9   : > { %v1116_v58 = vpop.eup %1115 }
 0x3ba   : > { %v323_v12 = vsel %vm322_vm5, %v1114_v22, %v319_v23  ;;  %v331_v7 = vmul.f32 %v1116_v58, %v314_v60  ;;  %vm336_vm6 = vweird.f32 %v1116_v58 }
 0x3bb   : > { %v328_v29 = vsel %vm325_vm14, %v327_v55, %v323_v12  ;;  %vm337_vm10 = vmor %vm335_vm8, %vm336_vm6 }
 0x3bc   : > { %v345_v59 = vmul.f32 %v328_v29, %v303_v28  ;;  %v332_v57 = vsub.f32 1.0, %v331_v7 }
 0x3be   : > { %v333_v8 = vmul.f32 %v1116_v58, %v332_v57  ;;  %v350_v51 = vmul.f32 %v348_v0, %v345_v59 }
 0x3c0   : > { %v334_v11 = vadd.f32 %v1116_v58, %v333_v8  ;;  %785 = vrot.lane.b32.xlu2 %v350_v51, %s1157_s20  ;;  %v691_v33 = vand.u32 2147483647, %v350_v51 }
 0x3c2   : > { %v338_v25 = vsel %vm337_vm10, %v1116_v58, %v334_v11  ;;  %v693_v31 = vsel %vm692_vm15, %v691_v33, -inf }
 0x3c3   : > { %v343_v46 = vsel %vm340_vm7, %v342_v45, %v338_v25  ;;  %v694_v28 = vrot.slane %v693_v31, 4 }
 0x3c4   : > { %v346_v32 = vmul.f32 %v343_v46, %v1655_v50 }
 0x3c5   : > { %v695_v47 = vmax.f32 %v693_v31, %v694_v28 }
 0x3c6   : > { %v351_v63 = vmul.f32 %v349_v61, %v346_v32 }
 0x3c7   : > { %v696_v44 = vrot.slane %v695_v47, 2 }
 0x3c8   : > { %787 = vrot.lane.b32.xlu1 %v351_v63, %s1157_s20  ;;  %v720_v9 = vand.u32 2147483647, %v351_v63 }
 0x3c9   : > { %v697_v22 = vmax.f32 %v695_v47, %v696_v44 }
 0x3ca   : > { %v721_v60 = vsel %vm692_vm15, %v720_v9, -inf }
 0x3cb   : > { %v698_v30 = vrot.slane %v697_v22, 1  ;;  %v722_v34 = vrot.slane %v721_v60, 4 }
 0x3cd   : > { %v699_v62 = vmax.f32 %v697_v22, %v698_v30  ;;  %v723_v24 = vmax.f32 %v721_v60, %v722_v34 }
 0x3cf   : > { %v700_v49 = vmul.f32 %v699_v62, %v1447_v48  ;;  %v724_v53 = vrot.slane %v723_v24, 2 }
 0x3d1   : > { %vm701_vm2 = vcmp.eq.f32.partialorder %v700_v49, 0.0  ;;  %v725_v26 = vmax.f32 %v723_v24, %v724_v53 }
 0x3d2   : > { %v702_v56 = vsel %vm701_vm2, 1.0, %v700_v49 }
 0x3d3   : > { %1117 = vrcp.f32 %v702_v56  ;;  %v726_v50 = vrot.slane %v725_v26, 1  ;;  %v714_v29 = vand.u32 2147483648, %v702_v56  ;;  %v712_v59 = vand.u32 2147483647, %v702_v56 }
 0x3d4   : > { %vm708_vm11 = vweird.f32 %v702_v56 }
 0x3d5   : > { %v727_v27 = vmax.f32 %v725_v26, %v726_v50  ;;  %v715_v54 = vor.u32 1.1754944e-38, %v714_v29  ;;  %vm713_vm13 = vcmp.eq.f32.partialorder %v712_v59, 8.507059e+37 }
 0x3d7   : > { %v728_v23 = vmul.f32 %v727_v27, %v1447_v48 }
 0x3d9   : > { %v1118_v58 = vpop.eup %1117  ;;  %vm729_vm12 = vcmp.eq.f32.partialorder %v728_v23, 0.0  ;;  %v746_v59 = vmul.f32 %v728_v23, %v1207_v3 }
 0x3da   : > { %v704_v55 = vmul.f32 %v1118_v58, %v702_v56  ;;  %v730_v12 = vsel %vm729_vm12, 1.0, %v728_v23  ;;  %vm709_vm0 = vweird.f32 %v1118_v58 }
 0x3db   : > { %1119 = vrcp.f32 %v730_v12  ;;  %vm710_vm9 = vmor %vm708_vm11, %vm709_vm0  ;;  %v742_v31 = vand.u32 2147483648, %v730_v12  ;;  %v740_v61 = vand.u32 2147483647, %v730_v12  ;;  %vm736_vm14 = vweird.f32 %v730_v12 }
 0x3dc   : > { %v705_v7 = vsub.f32 1.0, %v704_v55  ;;  %v718_v55 = vmul.f32 %v700_v49, %v1207_v3 }
 0x3dd   : > { %v743_v47 = vor.u32 1.1754944e-38, %v742_v31  ;;  %vm741_vm8 = vcmp.eq.f32.partialorder %v740_v61, 8.507059e+37 }
 0x3de   : > { %v706_v0 = vmul.f32 %v1118_v58, %v705_v7  ;;  %v719_v29 = vperm.slane %v718_v55, 4 }
 0x3e0   : > { %v707_v57 = vadd.f32 %v1118_v58, %v706_v0 }
 0x3e1   : > { %v1120_v8 = vpop.eup %1119 }
 0x3e2   : > { %v711_v13 = vsel %vm710_vm9, %v1118_v58, %v707_v57  ;;  %v732_v33 = vmul.f32 %v1120_v8, %v730_v12  ;;  %vm737_vm5 = vweird.f32 %v1120_v8 }
 0x3e3   : > { %v716_v11 = vsel %vm713_vm13, %v715_v54, %v711_v13  ;;  %vm738_vm6 = vmor %vm736_vm14, %vm737_vm5 }
 0x3e4   : > { %v748_v45 = vmul.f32 %v716_v11, %v350_v51  ;;  %v733_v25 = vsub.f32 1.0, %v732_v33 }
 0x3e6   : > { %v948_v46 = vclamps-f32 %v748_v45, 15.0  ;;  %v734_v28 = vmul.f32 %v1120_v8, %v733_v25 }
 0x3e8   : > { %v735_v32 = vadd.f32 %v1120_v8, %v734_v28  ;;  %v1029_v9 = vceil.f32 %v948_v46  ;;  %v1030_v22 = vfloor.f32 %v948_v46  ;;  %vm1028_vm10 = vcmp.lt.s32.totalorder %v948_v46, 0 }
 0x3ea   : > { %v739_v44 = vsel %vm738_vm6, %v1120_v8, %v735_v32  ;;  %v1031_v62 = vsel %vm1028_vm10, %v1029_v9, %v1030_v22  ;;  %v747_v8 = vperm.slane %v746_v59, 4 }
 0x3eb   : > { %v744_v60 = vsel %vm741_vm8, %v743_v47, %v739_v44  ;;  %v1032_v53 = vcvt.f32.s32 %v1031_v62 }
 0x3ec   : > { %v749_v30 = vmul.f32 %v744_v60, %v351_v63 }
 0x3ed   : > { %v759_v50 = vcvt.s32.f32 %v1032_v53 }
 0x3ee   : > { %v949_v34 = vclamps-f32 %v749_v30, 15.0 }
 0x3f0   : > { %vm1033_vm7 = vcmp.lt.s32.totalorder %v949_v34, 0  ;;  %v1034_v51 = vceil.f32 %v949_v34  ;;  %v1035_v24 = vfloor.f32 %v949_v34 }
 0x3f2   : > { %v1036_v26 = vsel %vm1033_vm7, %v1034_v51, %v1035_v24 }
 0x3f3   : > { %v1037_v56 = vcvt.f32.s32 %v1036_v26 }
 0x3f5   : > { %v760_v27 = vcvt.s32.f32 %v1037_v56 }
 0x3f7   : > { %v761_v58 = vpack.c.bf16 %v760_v27, %v759_v50 }
 0x3f9   : > { %772 = vmatpush.bf16.msrb.mxu0 %v761_v58 }
 0x421   : > { %v643_v12 = vpop.xlane.xlu1 %642 }
 0x422   : > { %v647_v7 = vmul.f32 %v643_v12, %v1447_v48 }
 0x424   : > { %vm649_vm2 = vcmp.eq.f32.partialorder %v647_v7, 0.0  ;;  %v779_v63 = vmul.f32 %v719_v29, %v647_v7 }
 0x425   : > { %v651_v0 = vsel %vm649_vm2, 1.0, %v647_v7 }
 0x426   : > { %1121 = vrcp.f32 %v651_v0  ;;  %v664_v25 = vand.u32 2147483648, %v651_v0  ;;  %v662_v46 = vand.u32 2147483647, %v651_v0  ;;  %vm658_vm11 = vweird.f32 %v651_v0 }
 0x428   : > { %v665_v23 = vor.u32 1.1754944e-38, %v664_v25  ;;  %vm663_vm13 = vcmp.eq.f32.partialorder %v662_v46, 8.507059e+37 }
 0x429   : > { %v646_v57 = vpop.xlane.xlu0 %645 }
 0x42a   : > { %v648_v54 = vmul.f32 %v646_v57, %v1447_v48 }
 0x42c   : > { %v1122_v13 = vpop.eup %1121  ;;  %vm650_vm12 = vcmp.eq.f32.partialorder %v648_v54, 0.0  ;;  %v780_v11 = vmul.f32 %v747_v8, %v648_v54 }
 0x42d   : > { %v654_v33 = vmul.f32 %v1122_v13, %v651_v0  ;;  %v652_v45 = vsel %vm650_vm12, 1.0, %v648_v54  ;;  %vm659_vm0 = vweird.f32 %v1122_v13 }
 0x42e   : > { %1123 = vrcp.f32 %v652_v45  ;;  %vm660_vm9 = vmor %vm658_vm11, %vm659_vm0  ;;  %v679_v60 = vand.u32 2147483648, %v652_v45  ;;  %v677_v62 = vand.u32 2147483647, %v652_v45  ;;  %vm673_vm14 = vweird.f32 %v652_v45 }
 0x42f   : > { %v655_v49 = vsub.f32 1.0, %v654_v33  ;;  %v786_v33 = vpop.permute.xlu2 %785 }
 0x430   : > { %v680_v24 = vor.u32 1.1754944e-38, %v679_v60  ;;  %vm678_vm8 = vcmp.eq.f32.partialorder %v677_v62, 8.507059e+37 }
 0x431   : > { %v656_v31 = vmul.f32 %v1122_v13, %v655_v49 }
 0x433   : > { %v657_v28 = vadd.f32 %v1122_v13, %v656_v31 }
 0x434   : > { %v1124_v61 = vpop.eup %1123 }
 0x435   : > { %v661_v32 = vsel %vm660_vm9, %v1122_v13, %v657_v28  ;;  %v669_v47 = vmul.f32 %v1124_v61, %v652_v45  ;;  %vm674_vm5 = vweird.f32 %v1124_v61 }
 0x436   : > { %v666_v44 = vsel %vm663_vm13, %v665_v23, %v661_v32  ;;  %vm675_vm6 = vmor %vm673_vm14, %vm674_vm5 }
 0x437   : > { %v683_v9 = vmul.f32 %v666_v44, %v1657_v52  ;;  %v670_v22 = vsub.f32 1.0, %v669_v47  ;;  %v968_v47 = vor.u32 %v1294_v21, %v1289_v20  ;;  %v964_v44 = vor.u32 %v1284_v19, %v1279_v18 }
 0x439   : > { %v946_v30 = vclamps-f32 %v683_v9, 15.0  ;;  %v671_v34 = vmul.f32 %v1124_v61, %v670_v22  ;;  %880 = vmatpush.bf16.msrb.mxu1 %v968_v47  ;;  %v960_v9 = vor.u32 %v1274_v17, %v1269_v16 }
 0x43a   : > { %v788_v46 = vpop.permute.xlu1 %787 }
 0x43b   : > { %v672_v51 = vadd.f32 %v1124_v61, %v671_v34  ;;  %v1019_v26 = vceil.f32 %v946_v30  ;;  %v1020_v56 = vfloor.f32 %v946_v30  ;;  %vm1018_vm10 = vcmp.lt.s32.totalorder %v946_v30, 0 }
 0x43c   : > { %v956_v30 = vor.u32 %v1264_v15, %v1259_v14 }
 0x43d   : > { %v676_v53 = vsel %vm675_vm6, %v1124_v61, %v672_v51  ;;  %v1021_v52 = vsel %vm1018_vm10, %v1019_v26, %v1020_v56  ;;  %881 = vmatpush.bf16.msrb.mxu1 %v964_v44 }
 0x43e   : > { %v681_v50 = vsel %vm678_vm8, %v680_v24, %v676_v53  ;;  %v1022_v7 = vcvt.f32.s32 %v1021_v52 }
 0x43f   : > { %v684_v27 = vmul.f32 %v681_v50, %v1663_v10 }
 0x440   : > { %v756_v59 = vcvt.s32.f32 %v1022_v7 }
 0x441   : > { %v947_v58 = vclamps-f32 %v684_v27, 15.0  ;;  %882 = vmatpush.bf16.msrb.mxu1 %v960_v9 }
 0x443   : > { %vm1023_vm7 = vcmp.lt.s32.totalorder %v947_v58, 0  ;;  %v1024_v55 = vceil.f32 %v947_v58  ;;  %v1025_v12 = vfloor.f32 %v947_v58 }
 0x445   : > { %v1026_v29 = vsel %vm1023_vm7, %v1024_v55, %v1025_v12  ;;  %883 = vmatpush.bf16.msrb.mxu1 %v956_v30 }
 0x446   : > { %v1027_v0 = vcvt.f32.s32 %v1026_v29 }
 0x448   : > { %v757_v57 = vcvt.s32.f32 %v1027_v0 }
 0x44a   : > { %v758_v54 = vpack.c.bf16 %v757_v57, %v756_v59 }
 0x44c   : > { %950 = vmatmul.msk.bf16.vlgmr.msrb.gmra.mxu0 %vm640_vm1, %v758_v54 }
 0x4c9   : > { %v774_v8 = vpop.f32.mrf.mxu0 }
 0x4ca   : > { %v781_v13 = vmul.f32 %v779_v63, %v774_v8 }
 0x4cc   : > { %v791_v45 = vmul.f32 %v786_v33, %v781_v13 }
 0x4ce   : > { %v793_v49 = vand.u32 2147483647, %v791_v45 }
 0x4d0   : > { %v795_v10 = vsel %vm692_vm15, %v793_v49, -inf }
 0x4d1   : > { %796 = vmax.xlane.f32.xlu0 %v795_v10  ;;  %v776_v25 = vpop.f32.mrf.mxu0 }
 0x4d2   : > { %v782_v31 = vmul.f32 %v780_v11, %v776_v25 }
 0x4d4   : > { %v792_v28 = vmul.f32 %v788_v46, %v782_v31 }
 0x4d6   : > { %v794_v61 = vand.u32 2147483647, %v792_v28 }
 0x4d8   : > { %v798_v23 = vsel %vm692_vm15, %v794_v61, -inf }
 0x4d9   : > { %799 = vmax.xlane.f32.xlu0 %v798_v23 }
 0x544   : > { %v797_v32 = vpop.xlane.xlu0 %796 }
 0x545   : > { %v1687_v63 = vmul.f32 %v797_v32, %v1447_v48 }
 0x547   : > { %vm803_vm1 = vcmp.eq.f32.partialorder %v1687_v63, 0.0 }
 0x548   : > { %v805_v11 = vsel %vm803_vm1, 1.0, %v1687_v63 }
 0x549   : > { %1125 = vrcp.f32 %v805_v11  ;;  %v818_v53 = vand.u32 2147483648, %v805_v11  ;;  %v816_v56 = vand.u32 2147483647, %v805_v11  ;;  %vm812_vm0 = vweird.f32 %v805_v11 }
 0x54b   : > { %vm817_vm9 = vcmp.eq.f32.partialorder %v816_v56, 8.507059e+37 }
 0x54c   : > { %v800_v22 = vpop.xlane.xlu0 %799 }
 0x54d   : > { %v802_v60 = vmul.f32 %v800_v22, %v1447_v48  ;;  %v819_v48 = vor.u32 1.1754944e-38, %v818_v53  ;;  %v848_v22 = vperm.slane %v1212_v4, 1 }
 0x54f   : > { %v1126_v34 = vpop.eup %1125  ;;  %vm804_vm2 = vcmp.eq.f32.partialorder %v802_v60, 0.0 }
 0x550   : > { %v808_v62 = vmul.f32 %v1126_v34, %v805_v11  ;;  %v806_v51 = vsel %vm804_vm2, 1.0, %v802_v60  ;;  %vm813_vm12 = vweird.f32 %v1126_v34 }
 0x551   : > { %1127 = vrcp.f32 %v806_v51  ;;  %vm814_vm11 = vmor %vm812_vm0, %vm813_vm12  ;;  %v833_v29 = vand.u32 2147483648, %v806_v51  ;;  %v831_v57 = vand.u32 2147483647, %v806_v51  ;;  %vm827_vm5 = vweird.f32 %v806_v51 }
 0x552   : > { %v809_v24 = vsub.f32 1.0, %v808_v62 }
 0x553   : > { %v834_v8 = vor.u32 1.1754944e-38, %v833_v29  ;;  %vm832_vm6 = vcmp.eq.f32.partialorder %v831_v57, 8.507059e+37 }
 0x554   : > { %v810_v26 = vmul.f32 %v1126_v34, %v809_v24 }
 0x556   : > { %v811_v50 = vadd.f32 %v1126_v34, %v810_v26 }
 0x557   : > { %v1128_v27 = vpop.eup %1127 }
 0x558   : > { %v815_v58 = vsel %vm814_vm11, %v1126_v34, %v811_v50  ;;  %v823_v52 = vmul.f32 %v1128_v27, %v806_v51  ;;  %vm828_vm13 = vweird.f32 %v1128_v27 }
 0x559   : > { %v820_v55 = vsel %vm817_vm9, %v819_v48, %v815_v58  ;;  %vm829_vm14 = vmor %vm827_vm5, %vm828_vm13 }
 0x55a   : > { %v837_v12 = vmul.f32 %v820_v55, %v791_v45  ;;  %v824_v7 = vsub.f32 1.0, %v823_v52 }
 0x55c   : > { %v951_v0 = vclamps-f32 %v837_v12, 15.0  ;;  %v825_v59 = vmul.f32 %v1128_v27, %v824_v7 }
 0x55e   : > { %v826_v54 = vadd.f32 %v1128_v27, %v825_v59  ;;  %v1039_v33 = vceil.f32 %v951_v0  ;;  %v1040_v49 = vfloor.f32 %v951_v0  ;;  %vm1038_vm8 = vcmp.lt.s32.totalorder %v951_v0, 0 }
 0x560   : > { %v830_v13 = vsel %vm829_vm14, %v1128_v27, %v826_v54  ;;  %v1041_v46 = vsel %vm1038_vm8, %v1039_v33, %v1040_v49 }
 0x561   : > { %v835_v10 = vsel %vm832_vm6, %v834_v8, %v830_v13  ;;  %v1042_v23 = vcvt.f32.s32 %v1041_v46 }
 0x562   : > { %v838_v25 = vmul.f32 %v835_v10, %v792_v28 }
 0x563   : > { %v845_v44 = vcvt.s32.f32 %v1042_v23 }
 0x564   : > { %v952_v31 = vclamps-f32 %v838_v25, 15.0 }
 0x566   : > { %vm1043_vm10 = vcmp.lt.s32.totalorder %v952_v31, 0  ;;  %v1044_v45 = vceil.f32 %v952_v31  ;;  %v1045_v61 = vfloor.f32 %v952_v31 }
 0x568   : > { %v1046_v32 = vsel %vm1043_vm10, %v1044_v45, %v1045_v61 }
 0x569   : > { %v1047_v47 = vcvt.f32.s32 %v1046_v32 }
 0x56b   : > { %v846_v11 = vcvt.s32.f32 %v1047_v47 }
 0x56d   : > { %v847_v9 = vpack.c.bf16 %v846_v11, %v845_v44 }
 0x56f   : > { %969 = vmatmul.msk.bf16.vlgmr.msrb.gmra.mxu1 %vm692_vm15, %v847_v9 }
 0x5ec   : > { %v885_v30 = vpop.f32.mrf.mxu1 }
 0x5ed   : > { %v886_v34 = vadd.f32 %v885_v30, %v848_v22 }
 0x5ef   : > { %v890_v62 = vmul.f32 %v886_v34, %v1687_v63 }
 0x5f1   : > { %v892_v28 = vadd.f32 %v1147_v1, %v890_v62  }
 0x5f3   : > { %v1792_v1 = vmov %v892_v28  ;;  %895 = vst.msk [vmem:[%s1722_s7] sm:$0xff] (%p81_p0), %vm89_vm4, %v892_v28 }
 0x5f4   : > { %v887_v51 = vpop.f32.mrf.mxu1 }
 0x5f5   : > { %v888_v24 = vadd.f32 %v887_v51, %v848_v22 }
 0x5f7   : > { %v891_v53 = vmul.f32 %v888_v24, %v802_v60  ;;  %83 = sbr.rel (!%p81_p0) target bundleno = 23 (0x17), region = 55 }
 0x5f9   : > { %v893_v26 = vadd.f32 %v1143_v2, %v891_v53  }
 0x5fb   : > { %v1791_v2 = vmov %v893_v26  ;;  %896 = vst.msk [vmem:[%s1722_s7 + $0x8] sm:$0xff] (%p81_p0), %vm89_vm4, %v893_v26 }

</bundles_post_ra>
